<compile_context>
chip_gen: v7x
topology: tpu7x:2x2x1
jax: 0.10.0
libtpu: 0.0.40
codegen_flags: <defaults>
</compile_context>

<pallas_src>
import functools

import numpy as np
import jax
import jax.numpy as jnp
from jax.experimental import pallas as pl
from jax.experimental.pallas import tpu as pltpu


_VMEM = pl.BlockSpec(memory_space=pltpu.MemorySpace.VMEM)


# ------------------------------ fused kernel -------------------------------

def _autoencoder_kernel(xa_ref, t1_ref, t2_ref, tt1_ref, tt2_ref,
                        b1_ref, b2_ref, bt1_ref, bt2_ref,
                        out_ref, h1s_ref, *, n_batch):
    f32 = jnp.float32

    # ------------- stage A: conv1 (3x3, pad 1) + ReLU + maxpool 2x2 --------
    # xa rows are ordered (n, ip, di, ib)  [ip = parity needed by conv2,
    # di = H pool phase, ib = output block row]; lanes are (kh, padded W col).
    # t1 columns are (dj, j, c) so one matmul yields every conv1 output pixel
    # already grouped by both pooling phases.
    h1s_ref[...] = jnp.zeros_like(h1s_ref)                 # zero (incl. H halo rows)
    res = jnp.dot(xa_ref[...], t1_ref[...], preferred_element_type=f32)   # (16N,256)
    cmax = jnp.maximum(res[:, 0:128], res[:, 128:256])                     # max over dj
    for n in range(n_batch):
        for ip in range(2):
            base = n * 16 + ip * 8
            pooled = jnp.maximum(cmax[base:base + 4, :],
                                 cmax[base + 4:base + 8, :])               # max over di
            h1 = jnp.maximum(pooled + b1_ref[...], 0.0)                    # (4,128)
            # rows 1..4 = data, rows 0 and 5 remain zero (H zero-padding halo)
            h1s_ref[ip, n, 1:5, :] = h1

    # ------------- stages B..D, per image (N is tiny & static) -------------
    for n in range(n_batch):
        # ---- conv2 (3x3, pad 1) + ReLU + maxpool 2x2 ----
        acc = []
        for di in range(2):                                 # H pool phase
            a_di = jnp.zeros((4, 32), f32)
            for kh in range(3):
                r = di + kh - 1                             # h1 row offset (-1..2)
                rp, rb = r % 2, r // 2                      # parity plane / block shift
                lhs = h1s_ref[rp, n, 1 + rb:5 + rb, :]      # (4,128), halo rows give 0-pad
                a_di = a_di + jnp.dot(lhs, t2_ref[kh],
                                      preferred_element_type=f32)          # (4,32)
            acc.append(a_di)
        pool_di = jnp.maximum(acc[0], acc[1])
        pooled2 = jnp.maximum(pool_di[:, 0:16], pool_di[:, 16:32])          # max over dj
        h2 = jnp.maximum(pooled2 + b2_ref[...], 0.0)                        # (4,16)

        # ---- tconv1 (2x2, stride 2) + ReLU ----
        h3 = jnp.maximum(jnp.dot(h2, tt1_ref[...], preferred_element_type=f32)
                         + bt1_ref[...], 0.0)                               # (4,256)

        # ---- tconv2 (2x2, stride 2) + sigmoid ----
        for a in range(2):                        # output-row parity from tconv1
            h3a = h3[:, a * 128:(a + 1) * 128]                              # (4,128)
            z = jnp.dot(h3a, tt2_ref[...], preferred_element_type=f32) + bt2_ref[...]
            y = pl.reciprocal(1.0 + jnp.exp(-z), approx=True)               # sigmoid
            out_ref[n, a, :, :] = y                                         # (4,32)


# ----------------------- wrapper-side layout plumbing -----------------------

def _build_xa(x_nchw):
    """Stage-A LHS: rows ordered (n, ip, di, ib); lanes (kh, padded W col)."""
    n_batch = x_nchw.shape[0]
    xpad = jnp.pad(x_nchw[:, 0].astype(jnp.float32), ((0, 0), (1, 1), (1, 1)))  # (N,18,18)
    rows = np.arange(n_batch * 16)
    n_i = rows // 16
    ip = (rows // 8) % 2
    di = (rows // 4) % 2
    ib = rows % 4
    h0 = 4 * ib + 2 * ip + di                                # conv1 output row
    h_idx = h0[:, None] + np.arange(3)[None, :]              # + kh -> padded input row
    xa = xpad[n_i[:, None], h_idx, :]                        # (16N, 3, 18)
    return xa.reshape(n_batch * 16, 3 * 18)


def _build_t1(w1):
    """(54,256): [kh*18+m, dj*128 + j*16 + c] = w1[c,0,kh, m-2j-dj] (valid kw only)."""
    dj = np.arange(2)[:, None, None, None]
    m = np.arange(18)[None, :, None, None]
    j = np.arange(8)[None, None, :, None]
    kw = np.arange(3)[None, None, None, :]
    mask = jnp.asarray(m == 2 * j + dj + kw, jnp.float32)    # (2,18,8,3)
    wk = jnp.transpose(w1[:, 0], (1, 2, 0))                  # (kh,kw,c)
    t = jnp.einsum('dmjk,hkc->dhmjc', mask, wk)              # (2,3,18,8,16)
    t = t.reshape(2, 3, 18, 128)
    return jnp.transpose(t, (1, 2, 0, 3)).reshape(54, 256)


def _build_t2(w2):
    """(3,128,32): [kh][j*16+ci, dj*16 + j2*4 + d] = w2[d,ci,kh, j-2*j2-dj+1]."""
    dj = np.arange(2)[:, None, None, None]
    j = np.arange(8)[None, :, None, None]
    j2 = np.arange(4)[None, None, :, None]
    kw = np.arange(3)[None, None, None, :]
    mask = jnp.asarray(j == 2 * j2 + dj + kw - 1, jnp.float32)  # (2,8,4,3)
    wk = jnp.transpose(w2, (2, 3, 1, 0))                        # (kh,kw,ci,d)
    t = jnp.einsum('pjak,hkco->phjcao', mask, wk)               # (2,3,8,16,4,4)
    t = t.reshape(2, 3, 128, 16)
    return jnp.transpose(t, (1, 2, 0, 3)).reshape(3, 128, 32)


def _build_tt1(wt1):
    """(16,256): [j2*4+d, a*128 + q*16 + c] = wt1[d,c,a,q%2] if q//2 == j2."""
    j2 = np.arange(4)[:, None]
    q = np.arange(8)[None, :]
    mask = jnp.asarray(q // 2 == j2, jnp.float32)               # (4,8)
    wq = wt1[..., np.arange(8) % 2]                             # (d,c,a,q)
    t = jnp.einsum('jq,dcaq->ajdqc', mask, wq)                  # (2,4,4,8,16)
    t = t.reshape(2, 16, 128)
    return jnp.transpose(t, (1, 0, 2)).reshape(16, 256)


def _build_tt2(wt2):
    """(128,32): [q*16+c, a2*16 + col] = wt2[c,0,a2,col%2] if col//2 == q."""
    q = np.arange(8)[:, None]
    col = np.arange(16)[None, :]
    mask = jnp.asarray(col // 2 == q, jnp.float32)              # (8,16)
    wc = wt2[:, 0][..., np.arange(16) % 2]                      # (c,a2,col)
    t = jnp.einsum('ql,cal->aqcl', mask, wc)                    # (2,8,16,16)
    t = t.reshape(2, 128, 16)
    return jnp.transpose(t, (1, 0, 2)).reshape(128, 32)


def conv_autoencoder_forward(x_nchw, p):
    n_batch = x_nchw.shape[0]
    xa = _build_xa(x_nchw)
    t1 = _build_t1(p["conv1_w"])
    t2 = _build_t2(p["conv2_w"])
    tt1 = _build_tt1(p["tconv1_w"])
    tt2 = _build_tt2(p["tconv2_w"])
    b1 = jnp.tile(p["conv1_b"], 8).reshape(1, 128)
    b2 = jnp.tile(p["conv2_b"], 4).reshape(1, 16)
    bt1 = jnp.tile(p["tconv1_b"], 16).reshape(1, 256)
    bt2 = jnp.full((1, 32), p["tconv2_b"][0], jnp.float32)

    kernel = functools.partial(_autoencoder_kernel, n_batch=n_batch)
    out = pl.pallas_call(
        kernel,
        out_shape=jax.ShapeDtypeStruct((n_batch, 2, 4, 32), jnp.float32),
        in_specs=[_VMEM] * 9,
        out_specs=_VMEM,
        scratch_shapes=[pltpu.VMEM((2, n_batch, 6, 128), jnp.float32)],
    )(xa, t1, t2, tt1, tt2, b1, b2, bt1, bt2)

    # out[n, a, i2, a2*16 + w]  with final output row = 4*i2 + 2*a + a2.
    o = out.reshape(n_batch, 2, 4, 2, 16)                    # (n, a, i2, a2, w)
    o = jnp.transpose(o, (0, 2, 1, 3, 4)).reshape(n_batch, 16, 16)
    return o[:, None, :, :]                                  # NCHW (C = 1)
    # TODO(synk): for large batches, add a grid over n with
    # dimension_semantics=("parallel",) so v7x's two TensorCores split the work.


# --------------------------- pure-JAX reference -----------------------------

def _conv3x3_relu_ref(x, w, b):
    N, H, W, _ = x.shape
    xp = jnp.pad(x, ((0, 0), (1, 1), (1, 1), (0, 0)))
    acc = jnp.zeros((N, H, W, w.shape[0]), jnp.float32)
    for kh in range(3):
        for kw in range(3):
            acc = acc + jnp.einsum("nhwi,oi->nhwo",
                                   xp[:, kh:kh + H, kw:kw + W, :], w[:, :, kh, kw])
    return jnp.maximum(acc + b, 0.0)


def _maxpool_ref(x):
    return jnp.maximum(jnp.maximum(x[:, 0::2, 0::2, :], x[:, 0::2, 1::2, :]),
                       jnp.maximum(x[:, 1::2, 0::2, :], x[:, 1::2, 1::2, :]))


def _tconv_ref(x, w, b, act):
    N, H, W, _ = x.shape
    Cout = w.shape[1]
    y = jnp.einsum("nhwi,ioab->nhawbo", x, w).reshape(N, 2 * H, 2 * W, Cout) + b
    return jnp.maximum(y, 0.0) if act == "relu" else 1.0 / (1.0 + jnp.exp(-y))


def _forward_ref(x_nchw, p):
    x = jnp.transpose(x_nchw, (0, 2, 3, 1))
    x = _conv3x3_relu_ref(x, p["conv1_w"], p["conv1_b"])
    x = _maxpool_ref(x)
    x = _conv3x3_relu_ref(x, p["conv2_w"], p["conv2_b"])
    x = _maxpool_ref(x)
    x = _tconv_ref(x, p["tconv1_w"], p["tconv1_b"], "relu")
    x = _tconv_ref(x, p["tconv2_w"], p["tconv2_b"], "sigmoid")
    return jnp.transpose(x, (0, 3, 1, 2))


# --------------------------------- params -----------------------------------

def init_params(key):
    ks = jax.random.split(key, 8)

    def u(k, shape, fan_in):
        bound = 1.0 / jnp.sqrt(jnp.float32(fan_in))
        return jax.random.uniform(k, shape, jnp.float32, -bound, bound)

    return {
        # nn.Conv2d(1, 16, 3): weight (16,1,3,3), bias (16,)
        "conv1_w": u(ks[0], (16, 1, 3, 3), 1 * 9),
        "conv1_b": u(ks[1], (16,), 1 * 9),
        # nn.Conv2d(16, 4, 3): weight (4,16,3,3), bias (4,)
        "conv2_w": u(ks[2], (4, 16, 3, 3), 16 * 9),
        "conv2_b": u(ks[3], (4,), 16 * 9),
        # nn.ConvTranspose2d(4, 16, 2): weight (4,16,2,2), bias (16,)
        "tconv1_w": u(ks[4], (4, 16, 2, 2), 4 * 4),
        "tconv1_b": u(ks[5], (16,), 4 * 4),
        # nn.ConvTranspose2d(16, 1, 2): weight (16,1,2,2), bias (1,)
        "tconv2_w": u(ks[6], (16, 1, 2, 2), 16 * 4),
        "tconv2_b": u(ks[7], (1,), 16 * 4),
    }


# ---------------------------------- main -------------------------------------

if __name__ == "__main__":
    key = jax.random.PRNGKey(0)
    pkey, xkey = jax.random.split(key)
    params = init_params(pkey)

    x = jax.random.normal(xkey, (2, 1, 16, 16), jnp.float32)  # NCHW, 1 channel

    out = jax.block_until_ready(jax.jit(conv_autoencoder_forward)(x, params))

    assert out.shape == (2, 1, 16, 16), out.shape
    assert bool(jnp.all(jnp.isfinite(out)))

    ref = jax.block_until_ready(jax.jit(_forward_ref)(x, params))
    # Loose tolerance: TPU default f32 matmul precision + approx reciprocal.
    assert bool(jnp.allclose(out, ref, atol=3e-2, rtol=3e-2)), float(
        jnp.max(jnp.abs(out - ref)))

    print("KERNEL_OK")
</pallas_src>

<mosaic_0001>
module attributes {stable_mosaic.version = 11 : i64} {
  func.func @_autoencoder_kernel(%arg0: memref<32x54xf32, #tpu.memory_space<vmem>>, %arg1: memref<54x256xf32, #tpu.memory_space<vmem>>, %arg2: memref<3x128x32xf32, #tpu.memory_space<vmem>>, %arg3: memref<16x256xf32, #tpu.memory_space<vmem>>, %arg4: memref<128x32xf32, #tpu.memory_space<vmem>>, %arg5: memref<1x128xf32, #tpu.memory_space<vmem>>, %arg6: memref<1x16xf32, #tpu.memory_space<vmem>>, %arg7: memref<1x256xf32, #tpu.memory_space<vmem>>, %arg8: memref<1x32xf32, #tpu.memory_space<vmem>>, %arg9: memref<2x2x4x32xf32, #tpu.memory_space<vmem>>, %arg10: memref<2x2x6x128xf32, #tpu.memory_space<vmem>>) attributes {dimension_semantics = [], scalar_prefetch = 0 : i64, scratch_operands = 1 : i64, tpu.core_type = #tpu.core_type<tc>} {
    %cst = arith.constant 0.000000e+00 : f32
    %0 = vector.broadcast %cst : f32 to vector<2x2x6x128xf32>
    %c0 = arith.constant 0 : index
    %c0_0 = arith.constant 0 : index
    %c0_1 = arith.constant 0 : index
    %c0_2 = arith.constant 0 : index
    %1 = vector.load %arg10[%c0, %c0_0, %c0_1, %c0_2] : memref<2x2x6x128xf32, #tpu.memory_space<vmem>>, vector<2x2x6x128xf32>
    tpu.vector_store %arg10[%c0, %c0_0, %c0_1, %c0_2], %0 {strides = array<i32>} : memref<2x2x6x128xf32, #tpu.memory_space<vmem>>, vector<2x2x6x128xf32>,
    %c0_3 = arith.constant 0 : index
    %c0_4 = arith.constant 0 : index
    %2 = vector.load %arg0[%c0_3, %c0_4] : memref<32x54xf32, #tpu.memory_space<vmem>>, vector<32x54xf32>
    %c0_5 = arith.constant 0 : index
    %c0_6 = arith.constant 0 : index
    %3 = vector.load %arg1[%c0_5, %c0_6] : memref<54x256xf32, #tpu.memory_space<vmem>>, vector<54x256xf32>
    %cst_7 = arith.constant dense<0.000000e+00> : vector<32x256xf32>
    %4 = tpu.matmul %2, %3, %cst_7 {dimension_numbers = #tpu.dot_dimension_numbers<[1], [0], [0], [1], [0, 0, 1, 1], [], []>} : vector<32x54xf32>, vector<54x256xf32>, vector<32x256xf32> -> vector<32x256xf32>
    %5 = vector.extract_strided_slice %4 {offsets = [0, 0], sizes = [32, 128], strides = [1, 1]} : vector<32x256xf32> to vector<32x128xf32>
    %6 = vector.extract_strided_slice %4 {offsets = [0, 128], sizes = [32, 128], strides = [1, 1]} : vector<32x256xf32> to vector<32x128xf32>
    %7 = arith.maximumf %5, %6 : vector<32x128xf32>
    %8 = vector.extract_strided_slice %7 {offsets = [0, 0], sizes = [4, 128], strides = [1, 1]} : vector<32x128xf32> to vector<4x128xf32>
    %9 = vector.extract_strided_slice %7 {offsets = [4, 0], sizes = [4, 128], strides = [1, 1]} : vector<32x128xf32> to vector<4x128xf32>
    %10 = arith.maximumf %8, %9 : vector<4x128xf32>
    %c0_8 = arith.constant 0 : index
    %c0_9 = arith.constant 0 : index
    %11 = vector.load %arg5[%c0_8, %c0_9] : memref<1x128xf32, #tpu.memory_space<vmem>>, vector<1x128xf32>
    %12 = vector.broadcast %11 : vector<1x128xf32> to vector<4x128xf32>
    %13 = arith.addf %10, %12 : vector<4x128xf32>
    %cst_10 = arith.constant 0.000000e+00 : f32
    %14 = vector.broadcast %cst_10 : f32 to vector<4x128xf32>
    %15 = arith.maximumf %13, %14 : vector<4x128xf32>
    %c0_11 = arith.constant 0 : index
    %c0_12 = arith.constant 0 : index
    %c1 = arith.constant 1 : index
    %c0_13 = arith.constant 0 : index
    %16 = vector.load %arg10[%c0_11, %c0_12, %c1, %c0_13] : memref<2x2x6x128xf32, #tpu.memory_space<vmem>>, vector<1x1x4x128xf32>
    %17 = vector.shape_cast %16 : vector<1x1x4x128xf32> to vector<4x128xf32>
    %18 = vector.shape_cast %15 : vector<4x128xf32> to vector<1x1x4x128xf32>
    tpu.vector_store %arg10[%c0_11, %c0_12, %c1, %c0_13], %18 {strides = array<i32>} : memref<2x2x6x128xf32, #tpu.memory_space<vmem>>, vector<1x1x4x128xf32>,
    %19 = vector.extract_strided_slice %7 {offsets = [8, 0], sizes = [4, 128], strides = [1, 1]} : vector<32x128xf32> to vector<4x128xf32>
    %20 = vector.extract_strided_slice %7 {offsets = [12, 0], sizes = [4, 128], strides = [1, 1]} : vector<32x128xf32> to vector<4x128xf32>
    %21 = arith.maximumf %19, %20 : vector<4x128xf32>
    %c0_14 = arith.constant 0 : index
    %c0_15 = arith.constant 0 : index
    %22 = vector.load %arg5[%c0_14, %c0_15] : memref<1x128xf32, #tpu.memory_space<vmem>>, vector<1x128xf32>
    %23 = vector.broadcast %22 : vector<1x128xf32> to vector<4x128xf32>
    %24 = arith.addf %21, %23 : vector<4x128xf32>
    %cst_16 = arith.constant 0.000000e+00 : f32
    %25 = vector.broadcast %cst_16 : f32 to vector<4x128xf32>
    %26 = arith.maximumf %24, %25 : vector<4x128xf32>
    %c1_17 = arith.constant 1 : index
    %c0_18 = arith.constant 0 : index
    %c1_19 = arith.constant 1 : index
    %c0_20 = arith.constant 0 : index
    %27 = vector.load %arg10[%c1_17, %c0_18, %c1_19, %c0_20] : memref<2x2x6x128xf32, #tpu.memory_space<vmem>>, vector<1x1x4x128xf32>
    %28 = vector.shape_cast %27 : vector<1x1x4x128xf32> to vector<4x128xf32>
    %29 = vector.shape_cast %26 : vector<4x128xf32> to vector<1x1x4x128xf32>
    tpu.vector_store %arg10[%c1_17, %c0_18, %c1_19, %c0_20], %29 {strides = array<i32>} : memref<2x2x6x128xf32, #tpu.memory_space<vmem>>, vector<1x1x4x128xf32>,
    %30 = vector.extract_strided_slice %7 {offsets = [16, 0], sizes = [4, 128], strides = [1, 1]} : vector<32x128xf32> to vector<4x128xf32>
    %31 = vector.extract_strided_slice %7 {offsets = [20, 0], sizes = [4, 128], strides = [1, 1]} : vector<32x128xf32> to vector<4x128xf32>
    %32 = arith.maximumf %30, %31 : vector<4x128xf32>
    %c0_21 = arith.constant 0 : index
    %c0_22 = arith.constant 0 : index
    %33 = vector.load %arg5[%c0_21, %c0_22] : memref<1x128xf32, #tpu.memory_space<vmem>>, vector<1x128xf32>
    %34 = vector.broadcast %33 : vector<1x128xf32> to vector<4x128xf32>
    %35 = arith.addf %32, %34 : vector<4x128xf32>
    %cst_23 = arith.constant 0.000000e+00 : f32
    %36 = vector.broadcast %cst_23 : f32 to vector<4x128xf32>
    %37 = arith.maximumf %35, %36 : vector<4x128xf32>
    %c0_24 = arith.constant 0 : index
    %c1_25 = arith.constant 1 : index
    %c1_26 = arith.constant 1 : index
    %c0_27 = arith.constant 0 : index
    %38 = vector.load %arg10[%c0_24, %c1_25, %c1_26, %c0_27] : memref<2x2x6x128xf32, #tpu.memory_space<vmem>>, vector<1x1x4x128xf32>
    %39 = vector.shape_cast %38 : vector<1x1x4x128xf32> to vector<4x128xf32>
    %40 = vector.shape_cast %37 : vector<4x128xf32> to vector<1x1x4x128xf32>
    tpu.vector_store %arg10[%c0_24, %c1_25, %c1_26, %c0_27], %40 {strides = array<i32>} : memref<2x2x6x128xf32, #tpu.memory_space<vmem>>, vector<1x1x4x128xf32>,
    %41 = vector.extract_strided_slice %7 {offsets = [24, 0], sizes = [4, 128], strides = [1, 1]} : vector<32x128xf32> to vector<4x128xf32>
    %42 = vector.extract_strided_slice %7 {offsets = [28, 0], sizes = [4, 128], strides = [1, 1]} : vector<32x128xf32> to vector<4x128xf32>
    %43 = arith.maximumf %41, %42 : vector<4x128xf32>
    %c0_28 = arith.constant 0 : index
    %c0_29 = arith.constant 0 : index
    %44 = vector.load %arg5[%c0_28, %c0_29] : memref<1x128xf32, #tpu.memory_space<vmem>>, vector<1x128xf32>
    %45 = vector.broadcast %44 : vector<1x128xf32> to vector<4x128xf32>
    %46 = arith.addf %43, %45 : vector<4x128xf32>
    %cst_30 = arith.constant 0.000000e+00 : f32
    %47 = vector.broadcast %cst_30 : f32 to vector<4x128xf32>
    %48 = arith.maximumf %46, %47 : vector<4x128xf32>
    %c1_31 = arith.constant 1 : index
    %c1_32 = arith.constant 1 : index
    %c1_33 = arith.constant 1 : index
    %c0_34 = arith.constant 0 : index
    %49 = vector.load %arg10[%c1_31, %c1_32, %c1_33, %c0_34] : memref<2x2x6x128xf32, #tpu.memory_space<vmem>>, vector<1x1x4x128xf32>
    %50 = vector.shape_cast %49 : vector<1x1x4x128xf32> to vector<4x128xf32>
    %51 = vector.shape_cast %48 : vector<4x128xf32> to vector<1x1x4x128xf32>
    tpu.vector_store %arg10[%c1_31, %c1_32, %c1_33, %c0_34], %51 {strides = array<i32>} : memref<2x2x6x128xf32, #tpu.memory_space<vmem>>, vector<1x1x4x128xf32>,
    %cst_35 = arith.constant 0.000000e+00 : f32
    %52 = vector.broadcast %cst_35 : f32 to vector<4x32xf32>
    %c1_36 = arith.constant 1 : index
    %c0_37 = arith.constant 0 : index
    %c0_38 = arith.constant 0 : index
    %c0_39 = arith.constant 0 : index
    %53 = vector.load %arg10[%c1_36, %c0_37, %c0_38, %c0_39] : memref<2x2x6x128xf32, #tpu.memory_space<vmem>>, vector<1x1x4x128xf32>
    %54 = vector.shape_cast %53 : vector<1x1x4x128xf32> to vector<4x128xf32>
    %c0_40 = arith.constant 0 : index
    %c0_41 = arith.constant 0 : index
    %c0_42 = arith.constant 0 : index
    %55 = vector.load %arg2[%c0_40, %c0_41, %c0_42] : memref<3x128x32xf32, #tpu.memory_space<vmem>>, vector<1x128x32xf32>
    %56 = vector.shape_cast %55 : vector<1x128x32xf32> to vector<128x32xf32>
    %cst_43 = arith.constant dense<0.000000e+00> : vector<4x32xf32>
    %57 = tpu.matmul %54, %56, %cst_43 {dimension_numbers = #tpu.dot_dimension_numbers<[1], [0], [0], [1], [0, 0, 1, 1], [], []>} : vector<4x128xf32>, vector<128x32xf32>, vector<4x32xf32> -> vector<4x32xf32>
    %58 = arith.addf %52, %57 : vector<4x32xf32>
    %c0_44 = arith.constant 0 : index
    %c0_45 = arith.constant 0 : index
    %c1_46 = arith.constant 1 : index
    %c0_47 = arith.constant 0 : index
    %59 = vector.load %arg10[%c0_44, %c0_45, %c1_46, %c0_47] : memref<2x2x6x128xf32, #tpu.memory_space<vmem>>, vector<1x1x4x128xf32>
    %60 = vector.shape_cast %59 : vector<1x1x4x128xf32> to vector<4x128xf32>
    %c1_48 = arith.constant 1 : index
    %c0_49 = arith.constant 0 : index
    %c0_50 = arith.constant 0 : index
    %61 = vector.load %arg2[%c1_48, %c0_49, %c0_50] : memref<3x128x32xf32, #tpu.memory_space<vmem>>, vector<1x128x32xf32>
    %62 = vector.shape_cast %61 : vector<1x128x32xf32> to vector<128x32xf32>
    %cst_51 = arith.constant dense<0.000000e+00> : vector<4x32xf32>
    %63 = tpu.matmul %60, %62, %cst_51 {dimension_numbers = #tpu.dot_dimension_numbers<[1], [0], [0], [1], [0, 0, 1, 1], [], []>} : vector<4x128xf32>, vector<128x32xf32>, vector<4x32xf32> -> vector<4x32xf32>
    %64 = arith.addf %58, %63 : vector<4x32xf32>
    %c1_52 = arith.constant 1 : index
    %c0_53 = arith.constant 0 : index
    %c1_54 = arith.constant 1 : index
    %c0_55 = arith.constant 0 : index
    %65 = vector.load %arg10[%c1_52, %c0_53, %c1_54, %c0_55] : memref<2x2x6x128xf32, #tpu.memory_space<vmem>>, vector<1x1x4x128xf32>
    %66 = vector.shape_cast %65 : vector<1x1x4x128xf32> to vector<4x128xf32>
    %c2 = arith.constant 2 : index
    %c0_56 = arith.constant 0 : index
    %c0_57 = arith.constant 0 : index
    %67 = vector.load %arg2[%c2, %c0_56, %c0_57] : memref<3x128x32xf32, #tpu.memory_space<vmem>>, vector<1x128x32xf32>
    %68 = vector.shape_cast %67 : vector<1x128x32xf32> to vector<128x32xf32>
    %cst_58 = arith.constant dense<0.000000e+00> : vector<4x32xf32>
    %69 = tpu.matmul %66, %68, %cst_58 {dimension_numbers = #tpu.dot_dimension_numbers<[1], [0], [0], [1], [0, 0, 1, 1], [], []>} : vector<4x128xf32>, vector<128x32xf32>, vector<4x32xf32> -> vector<4x32xf32>
    %70 = arith.addf %64, %69 : vector<4x32xf32>
    %cst_59 = arith.constant 0.000000e+00 : f32
    %71 = vector.broadcast %cst_59 : f32 to vector<4x32xf32>
    %c0_60 = arith.constant 0 : index
    %c0_61 = arith.constant 0 : index
    %c1_62 = arith.constant 1 : index
    %c0_63 = arith.constant 0 : index
    %72 = vector.load %arg10[%c0_60, %c0_61, %c1_62, %c0_63] : memref<2x2x6x128xf32, #tpu.memory_space<vmem>>, vector<1x1x4x128xf32>
    %73 = vector.shape_cast %72 : vector<1x1x4x128xf32> to vector<4x128xf32>
    %c0_64 = arith.constant 0 : index
    %c0_65 = arith.constant 0 : index
    %c0_66 = arith.constant 0 : index
    %74 = vector.load %arg2[%c0_64, %c0_65, %c0_66] : memref<3x128x32xf32, #tpu.memory_space<vmem>>, vector<1x128x32xf32>
    %75 = vector.shape_cast %74 : vector<1x128x32xf32> to vector<128x32xf32>
    %cst_67 = arith.constant dense<0.000000e+00> : vector<4x32xf32>
    %76 = tpu.matmul %73, %75, %cst_67 {dimension_numbers = #tpu.dot_dimension_numbers<[1], [0], [0], [1], [0, 0, 1, 1], [], []>} : vector<4x128xf32>, vector<128x32xf32>, vector<4x32xf32> -> vector<4x32xf32>
    %77 = arith.addf %71, %76 : vector<4x32xf32>
    %c1_68 = arith.constant 1 : index
    %c0_69 = arith.constant 0 : index
    %c1_70 = arith.constant 1 : index
    %c0_71 = arith.constant 0 : index
    %78 = vector.load %arg10[%c1_68, %c0_69, %c1_70, %c0_71] : memref<2x2x6x128xf32, #tpu.memory_space<vmem>>, vector<1x1x4x128xf32>
    %79 = vector.shape_cast %78 : vector<1x1x4x128xf32> to vector<4x128xf32>
    %c1_72 = arith.constant 1 : index
    %c0_73 = arith.constant 0 : index
    %c0_74 = arith.constant 0 : index
    %80 = vector.load %arg2[%c1_72, %c0_73, %c0_74] : memref<3x128x32xf32, #tpu.memory_space<vmem>>, vector<1x128x32xf32>
    %81 = vector.shape_cast %80 : vector<1x128x32xf32> to vector<128x32xf32>
    %cst_75 = arith.constant dense<0.000000e+00> : vector<4x32xf32>
    %82 = tpu.matmul %79, %81, %cst_75 {dimension_numbers = #tpu.dot_dimension_numbers<[1], [0], [0], [1], [0, 0, 1, 1], [], []>} : vector<4x128xf32>, vector<128x32xf32>, vector<4x32xf32> -> vector<4x32xf32>
    %83 = arith.addf %77, %82 : vector<4x32xf32>
    %c0_76 = arith.constant 0 : index
    %c0_77 = arith.constant 0 : index
    %c2_78 = arith.constant 2 : index
    %c0_79 = arith.constant 0 : index
    %84 = vector.load %arg10[%c0_76, %c0_77, %c2_78, %c0_79] : memref<2x2x6x128xf32, #tpu.memory_space<vmem>>, vector<1x1x4x128xf32>
    %85 = vector.shape_cast %84 : vector<1x1x4x128xf32> to vector<4x128xf32>
    %c2_80 = arith.constant 2 : index
    %c0_81 = arith.constant 0 : index
    %c0_82 = arith.constant 0 : index
    %86 = vector.load %arg2[%c2_80, %c0_81, %c0_82] : memref<3x128x32xf32, #tpu.memory_space<vmem>>, vector<1x128x32xf32>
    %87 = vector.shape_cast %86 : vector<1x128x32xf32> to vector<128x32xf32>
    %cst_83 = arith.constant dense<0.000000e+00> : vector<4x32xf32>
    %88 = tpu.matmul %85, %87, %cst_83 {dimension_numbers = #tpu.dot_dimension_numbers<[1], [0], [0], [1], [0, 0, 1, 1], [], []>} : vector<4x128xf32>, vector<128x32xf32>, vector<4x32xf32> -> vector<4x32xf32>
    %89 = arith.addf %83, %88 : vector<4x32xf32>
    %90 = arith.maximumf %70, %89 : vector<4x32xf32>
    %91 = vector.extract_strided_slice %90 {offsets = [0, 0], sizes = [4, 16], strides = [1, 1]} : vector<4x32xf32> to vector<4x16xf32>
    %92 = vector.extract_strided_slice %90 {offsets = [0, 16], sizes = [4, 16], strides = [1, 1]} : vector<4x32xf32> to vector<4x16xf32>
    %93 = arith.maximumf %91, %92 : vector<4x16xf32>
    %c0_84 = arith.constant 0 : index
    %c0_85 = arith.constant 0 : index
    %94 = vector.load %arg6[%c0_84, %c0_85] : memref<1x16xf32, #tpu.memory_space<vmem>>, vector<1x16xf32>
    %95 = vector.broadcast %94 : vector<1x16xf32> to vector<4x16xf32>
    %96 = arith.addf %93, %95 : vector<4x16xf32>
    %cst_86 = arith.constant 0.000000e+00 : f32
    %97 = vector.broadcast %cst_86 : f32 to vector<4x16xf32>
    %98 = arith.maximumf %96, %97 : vector<4x16xf32>
    %c0_87 = arith.constant 0 : index
    %c0_88 = arith.constant 0 : index
    %99 = vector.load %arg3[%c0_87, %c0_88] : memref<16x256xf32, #tpu.memory_space<vmem>>, vector<16x256xf32>
    %cst_89 = arith.constant dense<0.000000e+00> : vector<4x256xf32>
    %100 = tpu.matmul %98, %99, %cst_89 {dimension_numbers = #tpu.dot_dimension_numbers<[1], [0], [0], [1], [0, 0, 1, 1], [], []>} : vector<4x16xf32>, vector<16x256xf32>, vector<4x256xf32> -> vector<4x256xf32>
    %c0_90 = arith.constant 0 : index
    %c0_91 = arith.constant 0 : index
    %101 = vector.load %arg7[%c0_90, %c0_91] : memref<1x256xf32, #tpu.memory_space<vmem>>, vector<1x256xf32>
    %102 = vector.broadcast %101 : vector<1x256xf32> to vector<4x256xf32>
    %103 = arith.addf %100, %102 : vector<4x256xf32>
    %cst_92 = arith.constant 0.000000e+00 : f32
    %104 = vector.broadcast %cst_92 : f32 to vector<4x256xf32>
    %105 = arith.maximumf %103, %104 : vector<4x256xf32>
    %106 = vector.extract_strided_slice %105 {offsets = [0, 0], sizes = [4, 128], strides = [1, 1]} : vector<4x256xf32> to vector<4x128xf32>
    %c0_93 = arith.constant 0 : index
    %c0_94 = arith.constant 0 : index
    %107 = vector.load %arg4[%c0_93, %c0_94] : memref<128x32xf32, #tpu.memory_space<vmem>>, vector<128x32xf32>
    %cst_95 = arith.constant dense<0.000000e+00> : vector<4x32xf32>
    %108 = tpu.matmul %106, %107, %cst_95 {dimension_numbers = #tpu.dot_dimension_numbers<[1], [0], [0], [1], [0, 0, 1, 1], [], []>} : vector<4x128xf32>, vector<128x32xf32>, vector<4x32xf32> -> vector<4x32xf32>
    %c0_96 = arith.constant 0 : index
    %c0_97 = arith.constant 0 : index
    %109 = vector.load %arg8[%c0_96, %c0_97] : memref<1x32xf32, #tpu.memory_space<vmem>>, vector<1x32xf32>
    %110 = vector.broadcast %109 : vector<1x32xf32> to vector<4x32xf32>
    %111 = arith.addf %108, %110 : vector<4x32xf32>
    %cst_98 = arith.constant 0.000000e+00 : f32
    %112 = vector.broadcast %cst_98 : f32 to vector<4x32xf32>
    %113 = arith.subf %112, %111 : vector<4x32xf32>
    %114 = math.exp %113 : vector<4x32xf32>
    %cst_99 = arith.constant 1.000000e+00 : f32
    %115 = vector.broadcast %cst_99 : f32 to vector<4x32xf32>
    %116 = arith.addf %115, %114 : vector<4x32xf32>
    %117 = tpu.reciprocal %116 {approx = true} : vector<4x32xf32> -> vector<4x32xf32>
    %c0_100 = arith.constant 0 : index
    %c0_101 = arith.constant 0 : index
    %c0_102 = arith.constant 0 : index
    %c0_103 = arith.constant 0 : index
    %118 = vector.load %arg9[%c0_100, %c0_101, %c0_102, %c0_103] : memref<2x2x4x32xf32, #tpu.memory_space<vmem>>, vector<1x1x4x32xf32>
    %119 = vector.shape_cast %118 : vector<1x1x4x32xf32> to vector<4x32xf32>
    %120 = vector.shape_cast %117 : vector<4x32xf32> to vector<1x1x4x32xf32>
    tpu.vector_store %arg9[%c0_100, %c0_101, %c0_102, %c0_103], %120 {strides = array<i32>} : memref<2x2x4x32xf32, #tpu.memory_space<vmem>>, vector<1x1x4x32xf32>,
    %121 = vector.extract_strided_slice %105 {offsets = [0, 128], sizes = [4, 128], strides = [1, 1]} : vector<4x256xf32> to vector<4x128xf32>
    %c0_104 = arith.constant 0 : index
    %c0_105 = arith.constant 0 : index
    %122 = vector.load %arg4[%c0_104, %c0_105] : memref<128x32xf32, #tpu.memory_space<vmem>>, vector<128x32xf32>
    %cst_106 = arith.constant dense<0.000000e+00> : vector<4x32xf32>
    %123 = tpu.matmul %121, %122, %cst_106 {dimension_numbers = #tpu.dot_dimension_numbers<[1], [0], [0], [1], [0, 0, 1, 1], [], []>} : vector<4x128xf32>, vector<128x32xf32>, vector<4x32xf32> -> vector<4x32xf32>
    %c0_107 = arith.constant 0 : index
    %c0_108 = arith.constant 0 : index
    %124 = vector.load %arg8[%c0_107, %c0_108] : memref<1x32xf32, #tpu.memory_space<vmem>>, vector<1x32xf32>
    %125 = vector.broadcast %124 : vector<1x32xf32> to vector<4x32xf32>
    %126 = arith.addf %123, %125 : vector<4x32xf32>
    %cst_109 = arith.constant 0.000000e+00 : f32
    %127 = vector.broadcast %cst_109 : f32 to vector<4x32xf32>
    %128 = arith.subf %127, %126 : vector<4x32xf32>
    %129 = math.exp %128 : vector<4x32xf32>
    %cst_110 = arith.constant 1.000000e+00 : f32
    %130 = vector.broadcast %cst_110 : f32 to vector<4x32xf32>
    %131 = arith.addf %130, %129 : vector<4x32xf32>
    %132 = tpu.reciprocal %131 {approx = true} : vector<4x32xf32> -> vector<4x32xf32>
    %c0_111 = arith.constant 0 : index
    %c1_112 = arith.constant 1 : index
    %c0_113 = arith.constant 0 : index
    %c0_114 = arith.constant 0 : index
    %133 = vector.load %arg9[%c0_111, %c1_112, %c0_113, %c0_114] : memref<2x2x4x32xf32, #tpu.memory_space<vmem>>, vector<1x1x4x32xf32>
    %134 = vector.shape_cast %133 : vector<1x1x4x32xf32> to vector<4x32xf32>
    %135 = vector.shape_cast %132 : vector<4x32xf32> to vector<1x1x4x32xf32>
    tpu.vector_store %arg9[%c0_111, %c1_112, %c0_113, %c0_114], %135 {strides = array<i32>} : memref<2x2x4x32xf32, #tpu.memory_space<vmem>>, vector<1x1x4x32xf32>,
    %cst_115 = arith.constant 0.000000e+00 : f32
    %136 = vector.broadcast %cst_115 : f32 to vector<4x32xf32>
    %c1_116 = arith.constant 1 : index
    %c1_117 = arith.constant 1 : index
    %c0_118 = arith.constant 0 : index
    %c0_119 = arith.constant 0 : index
    %137 = vector.load %arg10[%c1_116, %c1_117, %c0_118, %c0_119] : memref<2x2x6x128xf32, #tpu.memory_space<vmem>>, vector<1x1x4x128xf32>
    %138 = vector.shape_cast %137 : vector<1x1x4x128xf32> to vector<4x128xf32>
    %c0_120 = arith.constant 0 : index
    %c0_121 = arith.constant 0 : index
    %c0_122 = arith.constant 0 : index
    %139 = vector.load %arg2[%c0_120, %c0_121, %c0_122] : memref<3x128x32xf32, #tpu.memory_space<vmem>>, vector<1x128x32xf32>
    %140 = vector.shape_cast %139 : vector<1x128x32xf32> to vector<128x32xf32>
    %cst_123 = arith.constant dense<0.000000e+00> : vector<4x32xf32>
    %141 = tpu.matmul %138, %140, %cst_123 {dimension_numbers = #tpu.dot_dimension_numbers<[1], [0], [0], [1], [0, 0, 1, 1], [], []>} : vector<4x128xf32>, vector<128x32xf32>, vector<4x32xf32> -> vector<4x32xf32>
    %142 = arith.addf %136, %141 : vector<4x32xf32>
    %c0_124 = arith.constant 0 : index
    %c1_125 = arith.constant 1 : index
    %c1_126 = arith.constant 1 : index
    %c0_127 = arith.constant 0 : index
    %143 = vector.load %arg10[%c0_124, %c1_125, %c1_126, %c0_127] : memref<2x2x6x128xf32, #tpu.memory_space<vmem>>, vector<1x1x4x128xf32>
    %144 = vector.shape_cast %143 : vector<1x1x4x128xf32> to vector<4x128xf32>
    %c1_128 = arith.constant 1 : index
    %c0_129 = arith.constant 0 : index
    %c0_130 = arith.constant 0 : index
    %145 = vector.load %arg2[%c1_128, %c0_129, %c0_130] : memref<3x128x32xf32, #tpu.memory_space<vmem>>, vector<1x128x32xf32>
    %146 = vector.shape_cast %145 : vector<1x128x32xf32> to vector<128x32xf32>
    %cst_131 = arith.constant dense<0.000000e+00> : vector<4x32xf32>
    %147 = tpu.matmul %144, %146, %cst_131 {dimension_numbers = #tpu.dot_dimension_numbers<[1], [0], [0], [1], [0, 0, 1, 1], [], []>} : vector<4x128xf32>, vector<128x32xf32>, vector<4x32xf32> -> vector<4x32xf32>
    %148 = arith.addf %142, %147 : vector<4x32xf32>
    %c1_132 = arith.constant 1 : index
    %c1_133 = arith.constant 1 : index
    %c1_134 = arith.constant 1 : index
    %c0_135 = arith.constant 0 : index
    %149 = vector.load %arg10[%c1_132, %c1_133, %c1_134, %c0_135] : memref<2x2x6x128xf32, #tpu.memory_space<vmem>>, vector<1x1x4x128xf32>
    %150 = vector.shape_cast %149 : vector<1x1x4x128xf32> to vector<4x128xf32>
    %c2_136 = arith.constant 2 : index
    %c0_137 = arith.constant 0 : index
    %c0_138 = arith.constant 0 : index
    %151 = vector.load %arg2[%c2_136, %c0_137, %c0_138] : memref<3x128x32xf32, #tpu.memory_space<vmem>>, vector<1x128x32xf32>
    %152 = vector.shape_cast %151 : vector<1x128x32xf32> to vector<128x32xf32>
    %cst_139 = arith.constant dense<0.000000e+00> : vector<4x32xf32>
    %153 = tpu.matmul %150, %152, %cst_139 {dimension_numbers = #tpu.dot_dimension_numbers<[1], [0], [0], [1], [0, 0, 1, 1], [], []>} : vector<4x128xf32>, vector<128x32xf32>, vector<4x32xf32> -> vector<4x32xf32>
    %154 = arith.addf %148, %153 : vector<4x32xf32>
    %cst_140 = arith.constant 0.000000e+00 : f32
    %155 = vector.broadcast %cst_140 : f32 to vector<4x32xf32>
    %c0_141 = arith.constant 0 : index
    %c1_142 = arith.constant 1 : index
    %c1_143 = arith.constant 1 : index
    %c0_144 = arith.constant 0 : index
    %156 = vector.load %arg10[%c0_141, %c1_142, %c1_143, %c0_144] : memref<2x2x6x128xf32, #tpu.memory_space<vmem>>, vector<1x1x4x128xf32>
    %157 = vector.shape_cast %156 : vector<1x1x4x128xf32> to vector<4x128xf32>
    %c0_145 = arith.constant 0 : index
    %c0_146 = arith.constant 0 : index
    %c0_147 = arith.constant 0 : index
    %158 = vector.load %arg2[%c0_145, %c0_146, %c0_147] : memref<3x128x32xf32, #tpu.memory_space<vmem>>, vector<1x128x32xf32>
    %159 = vector.shape_cast %158 : vector<1x128x32xf32> to vector<128x32xf32>
    %cst_148 = arith.constant dense<0.000000e+00> : vector<4x32xf32>
    %160 = tpu.matmul %157, %159, %cst_148 {dimension_numbers = #tpu.dot_dimension_numbers<[1], [0], [0], [1], [0, 0, 1, 1], [], []>} : vector<4x128xf32>, vector<128x32xf32>, vector<4x32xf32> -> vector<4x32xf32>
    %161 = arith.addf %155, %160 : vector<4x32xf32>
    %c1_149 = arith.constant 1 : index
    %c1_150 = arith.constant 1 : index
    %c1_151 = arith.constant 1 : index
    %c0_152 = arith.constant 0 : index
    %162 = vector.load %arg10[%c1_149, %c1_150, %c1_151, %c0_152] : memref<2x2x6x128xf32, #tpu.memory_space<vmem>>, vector<1x1x4x128xf32>
    %163 = vector.shape_cast %162 : vector<1x1x4x128xf32> to vector<4x128xf32>
    %c1_153 = arith.constant 1 : index
    %c0_154 = arith.constant 0 : index
    %c0_155 = arith.constant 0 : index
    %164 = vector.load %arg2[%c1_153, %c0_154, %c0_155] : memref<3x128x32xf32, #tpu.memory_space<vmem>>, vector<1x128x32xf32>
    %165 = vector.shape_cast %164 : vector<1x128x32xf32> to vector<128x32xf32>
    %cst_156 = arith.constant dense<0.000000e+00> : vector<4x32xf32>
    %166 = tpu.matmul %163, %165, %cst_156 {dimension_numbers = #tpu.dot_dimension_numbers<[1], [0], [0], [1], [0, 0, 1, 1], [], []>} : vector<4x128xf32>, vector<128x32xf32>, vector<4x32xf32> -> vector<4x32xf32>
    %167 = arith.addf %161, %166 : vector<4x32xf32>
    %c0_157 = arith.constant 0 : index
    %c1_158 = arith.constant 1 : index
    %c2_159 = arith.constant 2 : index
    %c0_160 = arith.constant 0 : index
    %168 = vector.load %arg10[%c0_157, %c1_158, %c2_159, %c0_160] : memref<2x2x6x128xf32, #tpu.memory_space<vmem>>, vector<1x1x4x128xf32>
    %169 = vector.shape_cast %168 : vector<1x1x4x128xf32> to vector<4x128xf32>
    %c2_161 = arith.constant 2 : index
    %c0_162 = arith.constant 0 : index
    %c0_163 = arith.constant 0 : index
    %170 = vector.load %arg2[%c2_161, %c0_162, %c0_163] : memref<3x128x32xf32, #tpu.memory_space<vmem>>, vector<1x128x32xf32>
    %171 = vector.shape_cast %170 : vector<1x128x32xf32> to vector<128x32xf32>
    %cst_164 = arith.constant dense<0.000000e+00> : vector<4x32xf32>
    %172 = tpu.matmul %169, %171, %cst_164 {dimension_numbers = #tpu.dot_dimension_numbers<[1], [0], [0], [1], [0, 0, 1, 1], [], []>} : vector<4x128xf32>, vector<128x32xf32>, vector<4x32xf32> -> vector<4x32xf32>
    %173 = arith.addf %167, %172 : vector<4x32xf32>
    %174 = arith.maximumf %154, %173 : vector<4x32xf32>
    %175 = vector.extract_strided_slice %174 {offsets = [0, 0], sizes = [4, 16], strides = [1, 1]} : vector<4x32xf32> to vector<4x16xf32>
    %176 = vector.extract_strided_slice %174 {offsets = [0, 16], sizes = [4, 16], strides = [1, 1]} : vector<4x32xf32> to vector<4x16xf32>
    %177 = arith.maximumf %175, %176 : vector<4x16xf32>
    %c0_165 = arith.constant 0 : index
    %c0_166 = arith.constant 0 : index
    %178 = vector.load %arg6[%c0_165, %c0_166] : memref<1x16xf32, #tpu.memory_space<vmem>>, vector<1x16xf32>
    %179 = vector.broadcast %178 : vector<1x16xf32> to vector<4x16xf32>
    %180 = arith.addf %177, %179 : vector<4x16xf32>
    %cst_167 = arith.constant 0.000000e+00 : f32
    %181 = vector.broadcast %cst_167 : f32 to vector<4x16xf32>
    %182 = arith.maximumf %180, %181 : vector<4x16xf32>
    %c0_168 = arith.constant 0 : index
    %c0_169 = arith.constant 0 : index
    %183 = vector.load %arg3[%c0_168, %c0_169] : memref<16x256xf32, #tpu.memory_space<vmem>>, vector<16x256xf32>
    %cst_170 = arith.constant dense<0.000000e+00> : vector<4x256xf32>
    %184 = tpu.matmul %182, %183, %cst_170 {dimension_numbers = #tpu.dot_dimension_numbers<[1], [0], [0], [1], [0, 0, 1, 1], [], []>} : vector<4x16xf32>, vector<16x256xf32>, vector<4x256xf32> -> vector<4x256xf32>
    %c0_171 = arith.constant 0 : index
    %c0_172 = arith.constant 0 : index
    %185 = vector.load %arg7[%c0_171, %c0_172] : memref<1x256xf32, #tpu.memory_space<vmem>>, vector<1x256xf32>
    %186 = vector.broadcast %185 : vector<1x256xf32> to vector<4x256xf32>
    %187 = arith.addf %184, %186 : vector<4x256xf32>
    %cst_173 = arith.constant 0.000000e+00 : f32
    %188 = vector.broadcast %cst_173 : f32 to vector<4x256xf32>
    %189 = arith.maximumf %187, %188 : vector<4x256xf32>
    %190 = vector.extract_strided_slice %189 {offsets = [0, 0], sizes = [4, 128], strides = [1, 1]} : vector<4x256xf32> to vector<4x128xf32>
    %c0_174 = arith.constant 0 : index
    %c0_175 = arith.constant 0 : index
    %191 = vector.load %arg4[%c0_174, %c0_175] : memref<128x32xf32, #tpu.memory_space<vmem>>, vector<128x32xf32>
    %cst_176 = arith.constant dense<0.000000e+00> : vector<4x32xf32>
    %192 = tpu.matmul %190, %191, %cst_176 {dimension_numbers = #tpu.dot_dimension_numbers<[1], [0], [0], [1], [0, 0, 1, 1], [], []>} : vector<4x128xf32>, vector<128x32xf32>, vector<4x32xf32> -> vector<4x32xf32>
    %c0_177 = arith.constant 0 : index
    %c0_178 = arith.constant 0 : index
    %193 = vector.load %arg8[%c0_177, %c0_178] : memref<1x32xf32, #tpu.memory_space<vmem>>, vector<1x32xf32>
    %194 = vector.broadcast %193 : vector<1x32xf32> to vector<4x32xf32>
    %195 = arith.addf %192, %194 : vector<4x32xf32>
    %cst_179 = arith.constant 0.000000e+00 : f32
    %196 = vector.broadcast %cst_179 : f32 to vector<4x32xf32>
    %197 = arith.subf %196, %195 : vector<4x32xf32>
    %198 = math.exp %197 : vector<4x32xf32>
    %cst_180 = arith.constant 1.000000e+00 : f32
    %199 = vector.broadcast %cst_180 : f32 to vector<4x32xf32>
    %200 = arith.addf %199, %198 : vector<4x32xf32>
    %201 = tpu.reciprocal %200 {approx = true} : vector<4x32xf32> -> vector<4x32xf32>
    %c1_181 = arith.constant 1 : index
    %c0_182 = arith.constant 0 : index
    %c0_183 = arith.constant 0 : index
    %c0_184 = arith.constant 0 : index
    %202 = vector.load %arg9[%c1_181, %c0_182, %c0_183, %c0_184] : memref<2x2x4x32xf32, #tpu.memory_space<vmem>>, vector<1x1x4x32xf32>
    %203 = vector.shape_cast %202 : vector<1x1x4x32xf32> to vector<4x32xf32>
    %204 = vector.shape_cast %201 : vector<4x32xf32> to vector<1x1x4x32xf32>
    tpu.vector_store %arg9[%c1_181, %c0_182, %c0_183, %c0_184], %204 {strides = array<i32>} : memref<2x2x4x32xf32, #tpu.memory_space<vmem>>, vector<1x1x4x32xf32>,
    %205 = vector.extract_strided_slice %189 {offsets = [0, 128], sizes = [4, 128], strides = [1, 1]} : vector<4x256xf32> to vector<4x128xf32>
    %c0_185 = arith.constant 0 : index
    %c0_186 = arith.constant 0 : index
    %206 = vector.load %arg4[%c0_185, %c0_186] : memref<128x32xf32, #tpu.memory_space<vmem>>, vector<128x32xf32>
    %cst_187 = arith.constant dense<0.000000e+00> : vector<4x32xf32>
    %207 = tpu.matmul %205, %206, %cst_187 {dimension_numbers = #tpu.dot_dimension_numbers<[1], [0], [0], [1], [0, 0, 1, 1], [], []>} : vector<4x128xf32>, vector<128x32xf32>, vector<4x32xf32> -> vector<4x32xf32>
    %c0_188 = arith.constant 0 : index
    %c0_189 = arith.constant 0 : index
    %208 = vector.load %arg8[%c0_188, %c0_189] : memref<1x32xf32, #tpu.memory_space<vmem>>, vector<1x32xf32>
    %209 = vector.broadcast %208 : vector<1x32xf32> to vector<4x32xf32>
    %210 = arith.addf %207, %209 : vector<4x32xf32>
    %cst_190 = arith.constant 0.000000e+00 : f32
    %211 = vector.broadcast %cst_190 : f32 to vector<4x32xf32>
    %212 = arith.subf %211, %210 : vector<4x32xf32>
    %213 = math.exp %212 : vector<4x32xf32>
    %cst_191 = arith.constant 1.000000e+00 : f32
    %214 = vector.broadcast %cst_191 : f32 to vector<4x32xf32>
    %215 = arith.addf %214, %213 : vector<4x32xf32>
    %216 = tpu.reciprocal %215 {approx = true} : vector<4x32xf32> -> vector<4x32xf32>
    %c1_192 = arith.constant 1 : index
    %c1_193 = arith.constant 1 : index
    %c0_194 = arith.constant 0 : index
    %c0_195 = arith.constant 0 : index
    %217 = vector.load %arg9[%c1_192, %c1_193, %c0_194, %c0_195] : memref<2x2x4x32xf32, #tpu.memory_space<vmem>>, vector<1x1x4x32xf32>
    %218 = vector.shape_cast %217 : vector<1x1x4x32xf32> to vector<4x32xf32>
    %219 = vector.shape_cast %216 : vector<4x32xf32> to vector<1x1x4x32xf32>
    tpu.vector_store %arg9[%c1_192, %c1_193, %c0_194, %c0_195], %219 {strides = array<i32>} : memref<2x2x4x32xf32, #tpu.memory_space<vmem>>, vector<1x1x4x32xf32>,
    return
  }
}

</mosaic_0001>

<bundles_post_ra>
// kernel: tile.18
= control target key start
LH: loop header
LB: loop body
LE: loop exit
PB: predicated region body
PF: predicated region fallthrough
CT: control target
= control target key end

     0   :  { %s22_s0 = inlined_call_operand.vmem [shape: f32[16], index: 0, kind: input, shape index: {}]   ;;  %s23_s1 = inlined_call_operand.vmem [shape: f32[8,16], index: 1, kind: output, shape index: {}]  }
   0x1   :  { %v4_v0 = vld [vmem:[%s22_s0] ss:$0 sm:$0xff] }
   0x2   :  { %5 = vst [vmem:[%s23_s1] sm:$0xff] %v4_v0 }

// kernel: tile.19
= control target key start
LH: loop header
LB: loop body
LE: loop exit
PB: predicated region body
PF: predicated region fallthrough
CT: control target
= control target key end

     0   :  { %s67_s10 = smov 112   ;;  %s68_s11 = smov 80   ;;  %vm3_vm0 = vcmask 130048   ;;  %vm9_vm1 = vcmask 1048448   ;;  %vm15_vm2 = vcmask 917248   ;;  %vm21_vm3 = vcmask 786048   ;;  %s111_s0 = inlined_call_operand.vmem [shape: f32[8,16], index: 0, kind: input, shape index: {}]   ;;  %s112_s1 = inlined_call_operand.vmem [shape: f32[1,128], index: 1, kind: output, shape index: {}]  }
   0x1   :  { %v53_v0 = vld [vmem:[%s111_s0 + $0x7] sm:$0x1]   ;;  %v55_v1 = vld [vmem:[%s111_s0 + $0x5] sm:$0x1]   ;;  %v54_v2 = vld [vmem:[%s111_s0 + $0x6] sm:$0x1]  }
   0x2   :  { %7 = vrot.lane.b32.xlu0 %v53_v0, %s67_s10  ;;  %19 = vrot.lane.b32.xlu1 %v55_v1, %s68_s11  ;;  %v56_v3 = vld [vmem:[%s111_s0 + $0x4] sm:$0x1]   ;;  %v2_v4 = vld [vmem:[%s111_s0] sm:$0x1]   ;;  %s69_s18 = smov 96   ;;  %s70_s19 = smov 64  }
   0x3   :  { %4 = vst.msk [vmem:[#allocation0] sm:$0x1] %vm3_vm0, %v2_v4   ;;  %v57_v5 = vld [vmem:[%s111_s0 + $0x3] sm:$0x1]   ;;  %v58_v6 = vld [vmem:[%s111_s0 + $0x2] sm:$0x1]  }
   0x4   :  { %s71_s24 = smov 48   ;;  %s72_s25 = smov 32   ;;  %v59_v7 = vld [vmem:[%s111_s0 + $0x1] sm:$0x1]   ;;  %vm27_vm4 = vcmask 654848   ;;  %vm33_vm5 = vcmask 523648  }
   0x5   :  { %s73_s0 = smov 16   ;;  %vm39_vm6 = vcmask 392448   ;;  %vm45_vm7 = vcmask 261248  }
   0x6   :  { %13 = vrot.lane.b32.xlu0 %v54_v2, %s69_s18  ;;  %25 = vrot.lane.b32.xlu1 %v56_v3, %s70_s19 }
   0xa   :  { %31 = vrot.lane.b32.xlu0 %v57_v5, %s71_s24  ;;  %37 = vrot.lane.b32.xlu1 %v58_v6, %s72_s25 }
   0xe   :  { %43 = vrot.lane.b32.xlu0 %v59_v7, %s73_s0 }
  0x74   :  { %v8_v8 = vpop.permute.xlu0 %7   ;;  %v20_v9 = vpop.permute.xlu1 %19  }
  0x75   :  { %10 = vst.msk [vmem:[#allocation0] sm:$0x1] %vm9_vm1, %v8_v8  }
  0x78   :  { %v14_v10 = vpop.permute.xlu0 %13   ;;  %v26_v11 = vpop.permute.xlu1 %25  }
  0x79   :  { %16 = vst.msk [vmem:[#allocation0] sm:$0x1] %vm15_vm2, %v14_v10  }
  0x7a   :  { %22 = vst.msk [vmem:[#allocation0] sm:$0x1] %vm21_vm3, %v20_v9  }
  0x7b   :  { %28 = vst.msk [vmem:[#allocation0] sm:$0x1] %vm27_vm4, %v26_v11  }
  0x7c   :  { %v32_v12 = vpop.permute.xlu0 %31   ;;  %v38_v13 = vpop.permute.xlu1 %37  }
  0x7d   :  { %34 = vst.msk [vmem:[#allocation0] sm:$0x1] %vm33_vm5, %v32_v12  }
  0x7e   :  { %40 = vst.msk [vmem:[#allocation0] sm:$0x1] %vm39_vm6, %v38_v13  }
  0x80   :  { %v44_v14 = vpop.permute.xlu0 %43  }
  0x81   :  { %46 = vst.msk [vmem:[#allocation0] sm:$0x1] %vm45_vm7, %v44_v14  }
  0x88   :  { %v50_v15 = vld [vmem:[#allocation0] sm:$0x1] }
  0x89   :  { %52 = vst [vmem:[%s112_s1] sm:$0x1] %v50_v15 }

// kernel: tile.23
= control target key start
LH: loop header
LB: loop body
LE: loop exit
PB: predicated region body
PF: predicated region fallthrough
CT: control target
= control target key end

     0   :  { %s22_s0 = inlined_call_operand.vmem [shape: f32[4], index: 0, kind: input, shape index: {}]   ;;  %s23_s1 = inlined_call_operand.vmem [shape: f32[4,4], index: 1, kind: output, shape index: {}]  }
   0x1   :  { %v4_v0 = vld [vmem:[%s22_s0] ss:$0 sm:$0xff] }
   0x2   :  { %5 = vst [vmem:[%s23_s1] sm:$0xf] %v4_v0 }

// kernel: tile.24
= control target key start
LH: loop header
LB: loop body
LE: loop exit
PB: predicated region body
PF: predicated region fallthrough
CT: control target
= control target key end

     0   :  { %vm7_vm0 = vcmask 31744   ;;  %s37_s8 = smov 4   ;;  %s38_s9 = smov 8   ;;  %vm13_vm1 = vcmask 130144   ;;  %vm19_vm2 = vcmask 97344   ;;  %vm25_vm3 = vcmask 64544   ;;  %s55_s0 = inlined_call_operand.vmem [shape: f32[4,4], index: 0, kind: input, shape index: {}]   ;;  %s56_s1 = inlined_call_operand.vmem [shape: f32[1,16], index: 1, kind: output, shape index: {}]  }
   0x1   :  { %v4_v0 = vld [vmem:[%s55_s0] sm:$0xf]  ;;  %s36_s0 = smov 12  }
   0x2   :  { %5 = vst [vmem:[#allocation1] sm:$0xf] %v4_v0 }
   0x9   :  { %v10_v1 = vld [vmem:[#allocation1 + $0x3] sm:$0x1]   ;;  %v22_v2 = vld [vmem:[#allocation1 + $0x1] sm:$0x1]   ;;  %v6_v3 = vld [vmem:[#allocation1] sm:$0x1]  }
   0xa   :  { %11 = vrot.lane.b32.xlu0 %v10_v1, %s36_s0  ;;  %23 = vrot.lane.b32.xlu1 %v22_v2, %s37_s8  ;;  %v16_v4 = vld [vmem:[#allocation1 + $0x2] sm:$0x1]   ;;  %8 = vst.msk [vmem:[#allocation0] sm:$0x1] %vm7_vm0, %v6_v3  }
   0xe   :  { %17 = vrot.lane.b32.xlu0 %v16_v4, %s38_s9 }
  0x7c   :  { %v12_v5 = vpop.permute.xlu0 %11   ;;  %v24_v6 = vpop.permute.xlu1 %23  }
  0x7d   :  { %14 = vst.msk [vmem:[#allocation0] sm:$0x1] %vm13_vm1, %v12_v5  }
  0x80   :  { %v18_v7 = vpop.permute.xlu0 %17  }
  0x81   :  { %20 = vst.msk [vmem:[#allocation0] sm:$0x1] %vm19_vm2, %v18_v7  }
  0x82   :  { %26 = vst.msk [vmem:[#allocation0] sm:$0x1] %vm25_vm3, %v24_v6  }
  0x89   :  { %v30_v8 = vld [vmem:[#allocation0] sm:$0x1] }
  0x8a   :  { %32 = vst [vmem:[%s56_s1] sm:$0x1] %v30_v8 }

// kernel: tile.28
= control target key start
LH: loop header
LB: loop body
LE: loop exit
PB: predicated region body
PF: predicated region fallthrough
CT: control target
= control target key end

     0   :  { %s28_s0 = inlined_call_operand.vmem [shape: f32[16], index: 0, kind: input, shape index: {}]   ;;  %s29_s1 = inlined_call_operand.vmem [shape: f32[16,16], index: 1, kind: output, shape index: {}]  }
   0x1   :  { %v4_v0 = vld [vmem:[%s28_s0] ss:$0 sm:$0xff] }
   0x2   :  { %5 = vst [vmem:[%s29_s1] sm:$0xff] %v4_v0  ;;  %8 = vst [vmem:[%s29_s1 + $0x8] sm:$0xff] %v4_v0 }

// kernel: tile.29
= control target key start
LH: loop header
LB: loop body
LE: loop exit
PB: predicated region body
PF: predicated region fallthrough
CT: control target
= control target key end

     0   :  { %s7_s6 = smov 3  ;;  %s21_s9 = smov 3  ;;  %vm4_vm0 = vcmask 130048   ;;  %vm11_vm1 = vcmask 1048448   ;;  %vm18_vm2 = vcmask 917248   ;;  %vm25_vm3 = vcmask 786048   ;;  %s128_s0 = inlined_call_operand.vmem [shape: f32[16,16], index: 0, kind: input, shape index: {}]   ;;  %s129_s1 = inlined_call_operand.vmem [shape: f32[1,256], index: 1, kind: output, shape index: {}]  }
   0x1   :  { %v66_v0 = vld [vmem:[%s128_s0 + $0x7] ss:$8 sm:%s7_s6]   ;;  %s81_s10 = smov 112   ;;  %v68_v1 = vld [vmem:[%s128_s0 + $0x5] ss:$8 sm:%s21_s9]   ;;  %s14_s13 = smov 3 }
   0x2   :  { %9 = vrot.lane.b32.xlu0 %v66_v0, %s81_s10  ;;  %s82_s14 = smov 80   ;;  %v67_v2 = vld [vmem:[%s128_s0 + $0x6] ss:$8 sm:%s14_s13]   ;;  %s28_s17 = smov 3  ;;  %vm32_vm4 = vcmask 654848   ;;  %vm39_vm5 = vcmask 523648  }
   0x3   :  { %23 = vrot.lane.b32.xlu1 %v68_v1, %s82_s14  ;;  %v69_v3 = vld [vmem:[%s128_s0 + $0x4] ss:$8 sm:%s28_s17]   ;;  %s35_s20 = smov 3  ;;  %s42_s21 = smov 3  ;;  %vm46_vm6 = vcmask 392448   ;;  %vm53_vm7 = vcmask 261248  }
   0x4   :  { %s83_s22 = smov 96   ;;  %s84_s23 = smov 64   ;;  %v70_v4 = vld [vmem:[%s128_s0 + $0x3] ss:$8 sm:%s35_s20]   ;;  %v71_v5 = vld [vmem:[%s128_s0 + $0x2] ss:$8 sm:%s42_s21]  }
   0x5   :  { %s2_s26 = smov 3  ;;  %s49_s29 = smov 3 }
   0x6   :  { %16 = vrot.lane.b32.xlu0 %v67_v2, %s83_s22  ;;  %v3_v6 = vld [vmem:[%s128_s0] ss:$8 sm:%s2_s26]   ;;  %s85_s3 = smov 48   ;;  %s86_s4 = smov 32  }
   0x7   :  { %30 = vrot.lane.b32.xlu1 %v69_v3, %s84_s23  ;;  %5 = vst.msk [vmem:[#allocation0] ss:$8 sm:$0x3] %vm4_vm0, %v3_v6   ;;  %v72_v7 = vld [vmem:[%s128_s0 + $0x1] ss:$8 sm:%s49_s29]   ;;  %s87_s0 = smov 16  }
   0xa   :  { %37 = vrot.lane.b32.xlu0 %v70_v4, %s85_s3 }
   0xb   :  { %44 = vrot.lane.b32.xlu1 %v71_v5, %s86_s4 }
   0xe   :  { %51 = vrot.lane.b32.xlu0 %v72_v7, %s87_s0 }
  0x74   :  { %v10_v8 = vpop.permute.xlu0 %9  }
  0x75   :  { %12 = vst.msk [vmem:[#allocation0] ss:$8 sm:$0x3] %vm11_vm1, %v10_v8   ;;  %v24_v9 = vpop.permute.xlu1 %23  }
  0x78   :  { %v17_v10 = vpop.permute.xlu0 %16  }
  0x79   :  { %19 = vst.msk [vmem:[#allocation0] ss:$8 sm:$0x3] %vm18_vm2, %v17_v10   ;;  %v31_v11 = vpop.permute.xlu1 %30  }
  0x7a   :  { %26 = vst.msk [vmem:[#allocation0] ss:$8 sm:$0x3] %vm25_vm3, %v24_v9  }
  0x7b   :  { %33 = vst.msk [vmem:[#allocation0] ss:$8 sm:$0x3] %vm32_vm4, %v31_v11  }
  0x7c   :  { %v38_v12 = vpop.permute.xlu0 %37  }
  0x7d   :  { %40 = vst.msk [vmem:[#allocation0] ss:$8 sm:$0x3] %vm39_vm5, %v38_v12   ;;  %v45_v13 = vpop.permute.xlu1 %44  }
  0x7e   :  { %47 = vst.msk [vmem:[#allocation0] ss:$8 sm:$0x3] %vm46_vm6, %v45_v13  }
  0x80   :  { %v52_v14 = vpop.permute.xlu0 %51  }
  0x81   :  { %54 = vst.msk [vmem:[#allocation0] ss:$8 sm:$0x3] %vm53_vm7, %v52_v14  }
  0x88   :  { %v58_v15 = vld [vmem:[#allocation0] sm:$0x1]  ;;  %v62_v16 = vld [vmem:[#allocation0 + $0x8] sm:$0x1] }
  0x89   :  { %60 = vst [vmem:[%s129_s1] sm:$0x1] %v58_v15  ;;  %73 = vst [vmem:[%s129_s1 + $0x1] sm:$0x1] %v62_v16 }

// kernel: conv_autoencoder_forward.1
= control target key start
LH: loop header
LB: loop body
LE: loop exit
PB: predicated region body
PF: predicated region fallthrough
CT: control target
= control target key end

     0   :  { %v3152_v3 = vmov 0.0   ;;  %v3153_v4 = vmov 0.0|0.0   ;;  %vm67_vm0 = vcmask 1045504   ;;  %vm54_vm1 = vcmask 441344   ;;  %s3155_s22 = smov 112   ;;  %s3913_s1 = inlined_call_operand.vmem [shape: f32[54,256], index: 1, kind: input, shape index: {}]   ;;  %s3914_s2 = inlined_call_operand.vmem [shape: f32[3,128,32], index: 2, kind: input, shape index: {}]   ;;  %s3915_s0 = inlined_call_operand.vmem [shape: f32[32,54], index: 0, kind: input, shape index: {}]   ;;  %s3916_s5 = inlined_call_operand.vmem [shape: f32[1,128], index: 5, kind: input, shape index: {}]   ;;  %s3917_s3 = inlined_call_operand.vmem [shape: f32[16,256], index: 3, kind: input, shape index: {}]   ;;  %s3918_s4 = inlined_call_operand.vmem [shape: f32[128,32], index: 4, kind: input, shape index: {}]   ;;  %s3919_s6 = inlined_call_operand.vmem [shape: f32[1,16], index: 6, kind: input, shape index: {}]   ;;  %s3920_s7 = inlined_call_operand.vmem [shape: f32[1,256], index: 7, kind: input, shape index: {}]   ;;  %s3921_s8 = inlined_call_operand.vmem [shape: f32[1,32], index: 8, kind: input, shape index: {}]   ;;  %s3922_s9 = inlined_call_operand.vmem [shape: f32[2,2,4,32], index: 9, kind: output, shape index: {}]  }
   0x1   :  { %v41_v0 = vld [vmem:[%s3913_s1 + $0x8] sm:$0xff]  ;;  %v43_v1 = vld [vmem:[%s3913_s1 + $0x18] sm:$0xff]  ;;  %v40_v2 = vld [vmem:[%s3913_s1] sm:$0xff]  ;;  %138 = vmatprep.mubr.f32.mxu0 %v3152_v3  ;;  %32 = vst [vmem:[#allocation2] sm:$0x3f] %v3152_v3  ;;  %2724 = vmatprep.subr.bf16.mxu1 %v3153_v4  ;;  %vm3154_vm2 = vmmov 0  }
   0x2   :  { %33 = vst [vmem:[#allocation2 + $0x8] sm:$0x3f] %v3152_v3  ;;  %34 = vst [vmem:[#allocation2 + $0x10] sm:$0x3f] %v3152_v3  ;;  %v2712_v5 = vpack.c.bf16 %v43_v1, %v41_v0  ;;  %v42_v6 = vld [vmem:[%s3913_s1 + $0x10] sm:$0xff]  ;;  %v45_v7 = vld [vmem:[%s3913_s1 + $0x28] sm:$0xff]  ;;  %2184 = vmatprep.mubr.msk.f32.mxu1 %vm3154_vm2, %v3152_v3 }
   0x3   :  { %35 = vst [vmem:[#allocation2 + $0x18] sm:$0x3f] %v3152_v3  ;;  %v47_v8 = vld [vmem:[%s3913_s1 + $0x38] sm:$0xff]  ;;  %v2714_v9 = vpack.c.bf16 %v42_v6, %v40_v2  ;;  %v44_v11 = vld [vmem:[%s3913_s1 + $0x20] sm:$0xff]  ;;  %v46_v12 = vld [vmem:[%s3913_s1 + $0x30] sm:$0xff]  ;;  %vm733_vm3 = vcmask 130048  }
   0x4   :  { %v2716_v10 = vpack.c.bf16 %v47_v8, %v45_v7  ;;  %v49_v13 = vld [vmem:[%s3913_s1 + $0x48] sm:$0xff]  ;;  %2713 = vmatprep.subr.bf16.mxu0 %v2712_v5  ;;  %v51_v14 = vld [vmem:[%s3913_s1 + $0x58] sm:$0xff]  ;;  %v2718_v15 = vpack.c.bf16 %v46_v12, %v44_v11  ;;  %v48_v16 = vld [vmem:[%s3913_s1 + $0x40] sm:$0xff]  ;;  %vm908_vm4 = vcmask 257024  }
   0x5   :  { %2715 = vmatpush1.bf16.msra.mxu0 %v2714_v9  ;;  %v2720_v17 = vpack.c.bf16 %v51_v14, %v49_v13  ;;  %v50_v18 = vld [vmem:[%s3913_s1 + $0x50] sm:$0xff]  ;;  %v1805_v19 = vld [vmem:[%s3914_s2 + $0x80] sm:$0xff]  ;;  %v1806_v20 = vld [vmem:[%s3914_s2 + $0x88] sm:$0xff] }
   0x6   :  { %2717 = vmatprep.subr.bf16.mxu0 %v2716_v10  ;;  %v3254_v21 = vpack.c.bf16 %v1806_v20, %v1805_v19  ;;  %v1807_v22 = vld [vmem:[%s3914_s2 + $0x90] sm:$0xff]  ;;  %v1808_v23 = vld [vmem:[%s3914_s2 + $0x98] sm:$0xff]  ;;  %v2722_v24 = vpack.c.bf16 %v50_v18, %v48_v16  ;;  %v1809_v26 = vld [vmem:[%s3914_s2 + $0xa0] sm:$0xff] }
   0x7   :  { %v3263_v25 = vpack.c.bf16 %v1808_v23, %v1807_v22  ;;  %v1810_v27 = vld [vmem:[%s3914_s2 + $0xa8] sm:$0xff]  ;;  %v52_v30 = vld [vmem:[%s3913_s1 + $0x60] sm:$0x3f]  ;;  %v1811_v33 = vld [vmem:[%s3914_s2 + $0xb0] sm:$0xff] }
   0x8   :  { %2726 = vmatpush3.bf16.msra.mxu1 %v3254_v21  ;;  %v53_v28 = vld [vmem:[%s3913_s1 + $0x68] sm:$0x3f]  ;;  %v3276_v29 = vpack.c.bf16 %v1810_v27, %v1809_v26  ;;  %v36_v31 = vld [vmem:[%s3915_s0] sm:$0xff]  ;;  %v1812_v34 = vld [vmem:[%s3914_s2 + $0xb8] sm:$0xff] }
   0x9   :  { %2719 = vmatpush1.bf16.msra.mxu0 %v2718_v15  ;;  %2727 = vmatprep.subr.bf16.mxu1 %v3153_v4  ;;  %v37_v32 = vld [vmem:[%s3915_s0 + $0x8] sm:$0xff]  ;;  %v3307_v35 = vpack.c.bf16 %v1812_v34, %v1811_v33  ;;  %v1813_v36 = vld [vmem:[%s3914_s2 + $0xc0] sm:$0xff]  ;;  %v1815_v39 = vld [vmem:[%s3914_s2 + $0xd0] sm:$0xff] }
   0xa   :  { %2721 = vmatprep.subr.bf16.mxu0 %v2720_v17  ;;  %v1814_v37 = vld [vmem:[%s3914_s2 + $0xc8] sm:$0xff]  ;;  %v1816_v40 = vld [vmem:[%s3914_s2 + $0xd8] sm:$0xff]  ;;  %v1817_v42 = vld [vmem:[%s3914_s2 + $0xe0] sm:$0xff] }
   0xb   :  { %v3319_v38 = vpack.c.bf16 %v1814_v37, %v1813_v36  ;;  %v3331_v41 = vpack.c.bf16 %v1816_v40, %v1815_v39  ;;  %v1818_v43 = vld [vmem:[%s3914_s2 + $0xe8] sm:$0xff]  ;;  %v38_v45 = vld [vmem:[%s3915_s0 + $0x10] sm:$0xff]  ;;  %v1820_v47 = vld [vmem:[%s3914_s2 + $0xf8] sm:$0xff] }
   0xc   :  { %2729 = vmatpush3.bf16.msra.mxu1 %v3263_v25  ;;  %v3343_v44 = vpack.c.bf16 %v1818_v43, %v1817_v42  ;;  %v1819_v46 = vld [vmem:[%s3914_s2 + $0xf0] sm:$0xff]  ;;  %v39_v49 = vld [vmem:[%s3915_s0 + $0x18] sm:$0xff]  ;;  %v3377_v55 = vld [vmem:[%s3916_s5] ss:$0 sm:$0xff] }
   0xd   :  { %2723 = vmatpush1.bf16.msra.mxu0 %v2722_v24  ;;  %2730 = vmatprep.subr.bf16.mxu1 %v3153_v4  ;;  %v3359_v48 = vpack.c.bf16 %v1820_v47, %v1819_v46  ;;  %v227_v1 = vld [vmem:[%s3914_s2] sm:$0xff]  ;;  %v228_v2 = vld [vmem:[%s3914_s2 + $0x8] sm:$0xff]  ;;  %v229_v6 = vld [vmem:[%s3914_s2 + $0x10] sm:$0xff] }
   0xe   :  { %1795 = vmatprep.subr.msk.mxu0 %vm67_vm0, %v53_v28  ;;  %v3387_v5 = vpack.c.bf16 %v228_v2, %v227_v1  ;;  %v230_v7 = vld [vmem:[%s3914_s2 + $0x18] sm:$0xff]  ;;  %v231_v10 = vld [vmem:[%s3914_s2 + $0x20] sm:$0xff]  ;;  %v232_v11 = vld [vmem:[%s3914_s2 + $0x28] sm:$0xff] }
   0xf   :  { %v3399_v9 = vpack.c.bf16 %v230_v7, %v229_v6  ;;  %v3415_v13 = vpack.c.bf16 %v232_v11, %v231_v10  ;;  %v233_v14 = vld [vmem:[%s3914_s2 + $0x30] sm:$0xff]  ;;  %v234_v15 = vld [vmem:[%s3914_s2 + $0x38] sm:$0xff]  ;;  %v235_v17 = vld [vmem:[%s3914_s2 + $0x40] sm:$0xff] }
  0x10   :  { %2732 = vmatpush3.bf16.msra.mxu1 %v3276_v29  ;;  %v3429_v16 = vpack.c.bf16 %v234_v15, %v233_v14  ;;  %v236_v18 = vld [vmem:[%s3914_s2 + $0x48] sm:$0xff]  ;;  %v237_v20 = vld [vmem:[%s3914_s2 + $0x50] sm:$0xff]  ;;  %v238_v22 = vld [vmem:[%s3914_s2 + $0x58] sm:$0xff] }
  0x11   :  { %1796 = vmatpush1.msk.msra.mxu0 %vm67_vm0, %v52_v30  ;;  %2733 = vmatprep.subr.bf16.mxu1 %v3153_v4  ;;  %v3441_v19 = vpack.c.bf16 %v236_v18, %v235_v17  ;;  %v3453_v23 = vpack.c.bf16 %v238_v22, %v237_v20  ;;  %v239_v24 = vld [vmem:[%s3914_s2 + $0x60] sm:$0xff]  ;;  %v240_v26 = vld [vmem:[%s3914_s2 + $0x68] sm:$0xff]  ;;  %v241_v28 = vld [vmem:[%s3914_s2 + $0x70] sm:$0xff] }
  0x12   :  { %1797 = vmatmul.mubr.msk.f32.vlgmr.msra.gmra.mrb[0].mxu0 %vm54_vm1, %v36_v31  ;;  %2796 = vmatprep.subr.bf16.mxu0 %v3153_v4  ;;  %v3465_v27 = vpack.c.bf16 %v240_v26, %v239_v24  ;;  %v242_v30 = vld [vmem:[%s3914_s2 + $0x78] sm:$0xff]  ;;  %v1822_v33 = vld [vmem:[%s3914_s2 + $0x108] sm:$0xff]  ;;  %v1823_v36 = vld [vmem:[%s3914_s2 + $0x110] sm:$0xff] }
  0x13   :  { %144 = vmatprep.mubr.f32.mxu0 %v3152_v3  ;;  %2798 = vmatpush3.bf16.msra.mxu0 %v3254_v21  ;;  %v3477_v31 = vpack.c.bf16 %v242_v30, %v241_v28  ;;  %v1824_v37 = vld [vmem:[%s3914_s2 + $0x118] sm:$0xff]  ;;  %v1825_v42 = vld [vmem:[%s3914_s2 + $0x120] sm:$0xff]  ;;  %v1826_v43 = vld [vmem:[%s3914_s2 + $0x128] sm:$0xff] }
  0x14   :  { %2799 = vmatprep.subr.bf16.mxu0 %v3153_v4  ;;  %2735 = vmatpush3.bf16.msra.mxu1 %v3307_v35  ;;  %v3501_v40 = vpack.c.bf16 %v1824_v37, %v1823_v36  ;;  %v1827_v46 = vld [vmem:[%s3914_s2 + $0x130] sm:$0xff]  ;;  %v1828_v47 = vld [vmem:[%s3914_s2 + $0x138] sm:$0xff]  ;;  %v718_v22 = vld [vmem:[%s3917_s3 + $0x8] sm:$0xff] }
  0x15   :  { %2736 = vmatprep.subr.bf16.mxu1 %v3153_v4  ;;  %v720_v24 = vld [vmem:[%s3917_s3 + $0x18] sm:$0xff]  ;;  %v717_v28 = vld [vmem:[%s3917_s3] sm:$0xff]  ;;  %v811_v37 = vld [vmem:[%s3918_s4 + $0x8] sm:$0xff] }
  0x16   :  { %1798 = vmatmul.mubr.msk.f32.gmra.mrb[2].mxu0 %vm54_vm1, %v37_v32  ;;  %v1821_v32 = vld [vmem:[%s3914_s2 + $0x100] sm:$0xff]  ;;  %v3599_v26 = vpack.c.bf16 %v720_v24, %v718_v22  ;;  %v825_v22 = vld [vmem:[%s3918_s4 + $0x78] sm:$0xff] }
  0x17   :  { %2801 = vmatpush3.bf16.msra.mxu0 %v3263_v25  ;;  %150 = vmatprep.mubr.f32.mxu0 %v3152_v3  ;;  %v3489_v34 = vpack.c.bf16 %v1822_v33, %v1821_v32  ;;  %v810_v36 = vld [vmem:[%s3918_s4] sm:$0xff] }
  0x18   :  { %2802 = vmatprep.subr.bf16.mxu0 %v3153_v4  ;;  %2738 = vmatpush3.bf16.msra.mxu1 %v3319_v38 }
  0x19   :  { %2739 = vmatprep.subr.bf16.mxu1 %v3153_v4 }
  0x1a   :  { %1799 = vmatmul.mubr.msk.f32.gmra.mrb[4].mxu0 %vm54_vm1, %v38_v45  ;;  %v3516_v45 = vpack.c.bf16 %v1826_v43, %v1825_v42  ;;  %v812_v42 = vld [vmem:[%s3918_s4 + $0x10] sm:$0xff]  ;;  %v813_v43 = vld [vmem:[%s3918_s4 + $0x18] sm:$0xff] }
  0x1b   :  { %2804 = vmatpush3.bf16.msra.mxu0 %v3276_v29  ;;  %156 = vmatprep.mubr.f32.mxu0 %v3152_v3 }
  0x1c   :  { %2805 = vmatprep.subr.bf16.mxu0 %v3153_v4  ;;  %2741 = vmatpush3.bf16.msra.mxu1 %v3331_v41 }
  0x1d   :  { %2742 = vmatprep.subr.bf16.mxu1 %v3153_v4 }
  0x1e   :  { %1800 = vmatmul.mubr.msk.f32.gmra.mrb[6].mxu0 %vm54_vm1, %v39_v49  ;;  %v3530_v49 = vpack.c.bf16 %v1828_v47, %v1827_v46  ;;  %v3627_v47 = vpack.c.bf16 %v813_v43, %v812_v42 }
  0x1f   :  { %2807 = vmatpush3.bf16.msra.mxu0 %v3307_v35  ;;  %2289 = vmatprep.mubr.msk.f32.mxu0 %vm3154_vm2, %v3152_v3 }
  0x20   :  { %2808 = vmatprep.subr.bf16.mxu0 %v3153_v4  ;;  %2744 = vmatpush3.bf16.msra.mxu1 %v3343_v44 }
  0x21   :  { %2745 = vmatprep.subr.bf16.mxu1 %v3153_v4 }
  0x23   :  { %2810 = vmatpush3.bf16.msra.mxu0 %v3319_v38 }
  0x24   :  { %2811 = vmatprep.subr.bf16.mxu0 %v3153_v4  ;;  %2747 = vmatpush3.bf16.msra.mxu1 %v3359_v48 }
  0x25   :  { %2748 = vmatprep.subr.bf16.mxu1 %v3153_v4 }
  0x27   :  { %2813 = vmatpush3.bf16.msra.mxu0 %v3331_v41 }
  0x28   :  { %2814 = vmatprep.subr.bf16.mxu0 %v3153_v4 }
  0x2b   :  { %2816 = vmatpush3.bf16.msra.mxu0 %v3343_v44 }
  0x2c   :  { %2817 = vmatprep.subr.bf16.mxu0 %v3153_v4 }
  0x2f   :  { %2819 = vmatpush3.bf16.msra.mxu0 %v3359_v48 }
  0x30   :  { %2820 = vmatprep.subr.bf16.mxu0 %v3153_v4 }
  0xe5   :  { %v140_v50 = vpop.f32.mrb[0].mxu0 }
  0xe6   :  { %v142_v51 = vpop.f32.mrb[1].mxu0 }
  0xe7   :  { %v163_v52 = vmax.f32 %v140_v50, %v142_v51  ;;  %v1829_v50 = vld [vmem:[%s3914_s2 + $0x140] sm:$0xff]  ;;  %v1830_v51 = vld [vmem:[%s3914_s2 + $0x148] sm:$0xff] }
  0xe9   :  { %v168_v53 = vrot.slane %v163_v52, 4  ;;  %v146_v54 = vpop.f32.mrb[2].mxu0 }
  0xea   :  { %v148_v56 = vpop.f32.mrb[3].mxu0 }
  0xeb   :  { %v170_v57 = vmax.f32 %v163_v52, %v168_v53  ;;  %v164_v58 = vmax.f32 %v146_v54, %v148_v56  ;;  %v3542_v52 = vpack.c.bf16 %v1830_v51, %v1829_v50  ;;  %v1831_v53 = vld [vmem:[%s3914_s2 + $0x150] sm:$0xff]  ;;  %v1832_v54 = vld [vmem:[%s3914_s2 + $0x158] sm:$0xff] }
  0xec   :  { %v3554_v56 = vpack.c.bf16 %v1832_v54, %v1831_v53  ;;  %v814_v53 = vld [vmem:[%s3918_s4 + $0x20] sm:$0xff]  ;;  %v815_v54 = vld [vmem:[%s3918_s4 + $0x28] sm:$0xff] }
  0xed   :  { %v178_v59 = vadd.f32 %v3377_v55, %v170_v57  ;;  %v182_v60 = vrot.slane %v164_v58, 4  ;;  %v1833_v57 = vld [vmem:[%s3914_s2 + $0x160] sm:$0xff] }
  0xef   :  { %v179_v61 = vmax.f32 %v178_v59, 0.0  ;;  %v184_v62 = vmax.f32 %v164_v58, %v182_v60  ;;  %v1834_v58 = vld [vmem:[%s3914_s2 + $0x168] sm:$0xff]  ;;  %v1835_v60 = vld [vmem:[%s3914_s2 + $0x170] sm:$0xff] }
  0xf0   :  { %v3566_v59 = vpack.c.bf16 %v1834_v58, %v1833_v57  ;;  %v3638_v57 = vpack.c.bf16 %v815_v54, %v814_v53  ;;  %v816_v58 = vld [vmem:[%s3918_s4 + $0x30] sm:$0xff] }
  0xf1   :  { %180 = vst [vmem:[#allocation2 + $0x1] sm:$0xf] %v179_v61  ;;  %v192_v63 = vadd.f32 %v3377_v55, %v184_v62  ;;  %v1836_v61 = vld [vmem:[%s3914_s2 + $0x178] sm:$0xff] }
  0xf2   :  { %v3578_v62 = vpack.c.bf16 %v1836_v61, %v1835_v60  ;;  %v817_v60 = vld [vmem:[%s3918_s4 + $0x38] sm:$0xff] }
  0xf3   :  { %v193_v0 = vmax.f32 %v192_v63, 0.0  ;;  %v3648_v61 = vpack.c.bf16 %v817_v60, %v816_v58 }
  0xf5   :  { %195 = vst [vmem:[#allocation2 + $0x11] sm:$0xf] %v193_v0  ;;  %v152_v0 = vpop.f32.mrb[4].mxu0 }
  0xf6   :  { %v154_v1 = vpop.f32.mrb[5].mxu0 }
  0xf7   :  { %v165_v2 = vmax.f32 %v152_v0, %v154_v1  ;;  %v158_v7 = vpop.f32.mrb[6].mxu0  ;;  %v819_v0 = vld [vmem:[%s3918_s4 + $0x48] sm:$0xff] }
  0xf8   :  { %v3395_v8 = vld [vmem:[#allocation2 + $0x1] sm:$0xf] }
  0xf9   :  { %2185 = vmatmul.mubr.f32.vlgmr.msra.gmra.mrb[0].mxu1 %v3395_v8  ;;  %v630_v63 = vld [vmem:[#allocation2 + $0x2] sm:$0xf]  ;;  %v197_v6 = vrot.slane %v165_v2, 4 }
  0xfa   :  { %2750 = vmatpush3.bf16.msra.mxu1 %v3387_v5  ;;  %2219 = vmatprep.mubr.msk.f32.mxu1 %vm3154_vm2, %v3152_v3 }
  0xfb   :  { %2751 = vmatprep.subr.bf16.mxu1 %v3153_v4  ;;  %v199_v10 = vmax.f32 %v165_v2, %v197_v6  ;;  %v820_v2 = vld [vmem:[%s3918_s4 + $0x50] sm:$0xff]  ;;  %v821_v6 = vld [vmem:[%s3918_s4 + $0x58] sm:$0xff] }
  0xfc   :  { %v3410_v12 = vld [vmem:[#allocation2 + $0x11] sm:$0xf] }
  0xfd   :  { %2290 = vmatmul.mubr.f32.vlgmr.msra.gmra.mrb[8].mxu0 %v3410_v12  ;;  %v226_v39 = vld [vmem:[#allocation2 + $0x10] sm:$0xf] }
  0xfe   :  { %2753 = vmatpush3.bf16.msra.mxu1 %v3399_v9  ;;  %2822 = vmatpush3.bf16.msra.mxu0 %v3387_v5 }
  0xff   :  { %2754 = vmatprep.subr.bf16.mxu1 %v3153_v4  ;;  %2823 = vmatprep.subr.bf16.mxu0 %v3153_v4 }
 0x100   :  { %2324 = vmatprep.mubr.msk.f32.mxu0 %vm3154_vm2, %v3152_v3 }
 0x102   :  { %2756 = vmatpush3.bf16.msra.mxu1 %v3415_v13  ;;  %2825 = vmatpush3.bf16.msra.mxu0 %v3399_v9 }
 0x103   :  { %2757 = vmatprep.subr.bf16.mxu1 %v3153_v4  ;;  %2826 = vmatprep.subr.bf16.mxu0 %v3153_v4 }
 0x106   :  { %2759 = vmatpush3.bf16.msra.mxu1 %v3429_v16  ;;  %2828 = vmatpush3.bf16.msra.mxu0 %v3415_v13 }
 0x107   :  { %2760 = vmatprep.subr.bf16.mxu1 %v3153_v4  ;;  %2829 = vmatprep.subr.bf16.mxu0 %v3153_v4 }
 0x10a   :  { %2762 = vmatpush3.bf16.msra.mxu1 %v3441_v19  ;;  %2831 = vmatpush3.bf16.msra.mxu0 %v3429_v16 }
 0x10b   :  { %2763 = vmatprep.subr.bf16.mxu1 %v3153_v4  ;;  %2832 = vmatprep.subr.bf16.mxu0 %v3153_v4 }
 0x10e   :  { %2765 = vmatpush3.bf16.msra.mxu1 %v3453_v23  ;;  %2834 = vmatpush3.bf16.msra.mxu0 %v3441_v19 }
 0x10f   :  { %2766 = vmatprep.subr.bf16.mxu1 %v3153_v4  ;;  %2835 = vmatprep.subr.bf16.mxu0 %v3153_v4 }
 0x112   :  { %2768 = vmatpush3.bf16.msra.mxu1 %v3465_v27  ;;  %2837 = vmatpush3.bf16.msra.mxu0 %v3453_v23 }
 0x113   :  { %2769 = vmatprep.subr.bf16.mxu1 %v3153_v4  ;;  %2838 = vmatprep.subr.bf16.mxu0 %v3153_v4 }
 0x116   :  { %2771 = vmatpush3.bf16.msra.mxu1 %v3477_v31  ;;  %2840 = vmatpush3.bf16.msra.mxu0 %v3465_v27 }
 0x117   :  { %2772 = vmatprep.subr.bf16.mxu1 %v3153_v4  ;;  %2841 = vmatprep.subr.bf16.mxu0 %v3153_v4 }
 0x119   :  { %2220 = vmatmul.mubr.f32.vlgmr.msra.gmra.mrb[0].mxu1 %v226_v39  ;;  %v3618_v39 = vpack.c.bf16 %v811_v37, %v810_v36 }
 0x11a   :  { %2774 = vmatpush3.bf16.msra.mxu1 %v3489_v34  ;;  %2843 = vmatpush3.bf16.msra.mxu0 %v3477_v31 }
 0x11b   :  { %2775 = vmatprep.subr.bf16.mxu1 %v3153_v4  ;;  %2844 = vmatprep.subr.bf16.mxu0 %v3153_v4 }
 0x11c   :  { %2254 = vmatprep.mubr.msk.f32.mxu1 %vm3154_vm2, %v3152_v3 }
 0x11d   :  { %2325 = vmatmul.mubr.f32.vlgmr.msra.gmra.mrb[8].mxu0 %v3395_v8  ;;  %v160_v8 = vpop.f32.mrb[7].mxu0 }
 0x11e   :  { %2777 = vmatpush3.bf16.msra.mxu1 %v3501_v40  ;;  %2846 = vmatpush3.bf16.msra.mxu0 %v3489_v34  ;;  %v166_v11 = vmax.f32 %v158_v7, %v160_v8  ;;  %v3668_v7 = vpack.c.bf16 %v821_v6, %v820_v2  ;;  %v822_v8 = vld [vmem:[%s3918_s4 + $0x60] sm:$0xff] }
 0x11f   :  { %2778 = vmatprep.subr.bf16.mxu1 %v3153_v4  ;;  %2847 = vmatprep.subr.bf16.mxu0 %v3153_v4 }
 0x120   :  { %2359 = vmatprep.mubr.msk.f32.mxu0 %vm3154_vm2, %v3152_v3  ;;  %v212_v14 = vrot.slane %v166_v11, 4 }
 0x122   :  { %2780 = vmatpush3.bf16.msra.mxu1 %v3516_v45  ;;  %2849 = vmatpush3.bf16.msra.mxu0 %v3501_v40  ;;  %v214_v17 = vmax.f32 %v166_v11, %v212_v14 }
 0x123   :  { %2781 = vmatprep.subr.bf16.mxu1 %v3153_v4  ;;  %2850 = vmatprep.subr.bf16.mxu0 %v3153_v4 }
 0x124   :  { %v222_v18 = vadd.f32 %v3377_v55, %v214_v17 }
 0x126   :  { %2783 = vmatpush3.bf16.msra.mxu1 %v3530_v49  ;;  %2852 = vmatpush3.bf16.msra.mxu0 %v3516_v45  ;;  %v223_v20 = vmax.f32 %v222_v18, 0.0 }
 0x127   :  { %2784 = vmatprep.subr.bf16.mxu1 %v3153_v4  ;;  %2853 = vmatprep.subr.bf16.mxu0 %v3153_v4 }
 0x128   :  { %225 = vst [vmem:[#allocation2 + $0x19] sm:$0xf] %v223_v20  ;;  %v824_v20 = vld [vmem:[%s3918_s4 + $0x70] sm:$0xff] }
 0x129   :  { %v3712_v24 = vpack.c.bf16 %v825_v22, %v824_v20 }
 0x12a   :  { %2786 = vmatpush3.bf16.msra.mxu1 %v3542_v52  ;;  %2855 = vmatpush3.bf16.msra.mxu0 %v3530_v49 }
 0x12b   :  { %2787 = vmatprep.subr.bf16.mxu1 %v3153_v4  ;;  %2856 = vmatprep.subr.bf16.mxu0 %v3153_v4 }
 0x12e   :  { %2789 = vmatpush3.bf16.msra.mxu1 %v3554_v56  ;;  %2858 = vmatpush3.bf16.msra.mxu0 %v3542_v52 }
 0x12f   :  { %2790 = vmatprep.subr.bf16.mxu1 %v3153_v4  ;;  %2859 = vmatprep.subr.bf16.mxu0 %v3153_v4 }
 0x132   :  { %2792 = vmatpush3.bf16.msra.mxu1 %v3566_v59  ;;  %2861 = vmatpush3.bf16.msra.mxu0 %v3554_v56 }
 0x133   :  { %2793 = vmatprep.subr.bf16.mxu1 %v3153_v4  ;;  %2862 = vmatprep.subr.bf16.mxu0 %v3153_v4 }
 0x136   :  { %2795 = vmatpush3.bf16.msra.mxu1 %v3578_v62  ;;  %2864 = vmatpush3.bf16.msra.mxu0 %v3566_v59 }
 0x137   :  { %2865 = vmatprep.subr.bf16.mxu0 %v3153_v4  ;;  %2869 = vmatprep.subr.bf16.mxu1 %v3599_v26 }
 0x139   :  { %2255 = vmatmul.mubr.f32.vlgmr.msra.gmra.mrb[0].mxu1 %v3410_v12  ;;  %v207_v12 = vadd.f32 %v3377_v55, %v199_v10  ;;  %v719_v55 = vld [vmem:[%s3917_s3 + $0x10] sm:$0xff]  ;;  %v823_v10 = vld [vmem:[%s3918_s4 + $0x68] sm:$0xff] }
 0x13a   :  { %2867 = vmatpush3.bf16.msra.mxu0 %v3578_v62  ;;  %801 = vmatprep.mubr.f32.mxu1 %v3152_v3  ;;  %v3607_v30 = vpack.c.bf16 %v719_v55, %v717_v28  ;;  %v3678_v11 = vpack.c.bf16 %v823_v10, %v822_v8  ;;  %v723_v28 = vlaneseq }
 0x13b   :  { %2896 = vmatprep.subr.bf16.mxu0 %v3153_v4  ;;  %v208_v15 = vmax.f32 %v207_v12, 0.0  ;;  %v3686_v12 = vld [vmem:[%s3919_s6] ss:$0 sm:$0xff] }
 0x13c   :  { %2871 = vmatpush1.bf16.msra.mxu1 %v3607_v30  ;;  %v3718_v55 = vshrl.u32 %v723_v28, 7 }
 0x13d   :  { %2360 = vmatmul.mubr.f32.vlgmr.msra.gmra.mrb[8].mxu0 %v630_v63  ;;  %210 = vst [vmem:[#allocation2 + $0x9] sm:$0xf] %v208_v15  ;;  %2872 = vmatprep.subr.bf16.mxu1 %v3153_v4  ;;  %v818_v63 = vld [vmem:[%s3918_s4 + $0x40] sm:$0xff] }
 0x13e   :  { %2429 = vmatprep.mubr.msk.f32.mxu0 %vm3154_vm2, %v3152_v3  ;;  %2898 = vmatpush3.bf16.msra.mxu0 %v3618_v39  ;;  %v3658_v1 = vpack.c.bf16 %v819_v0, %v818_v63  ;;  %v729_v36 = vsub.s32 1, %v3718_v55 }
 0x13f   :  { %2899 = vmatprep.subr.bf16.mxu0 %v3153_v4 }
 0x142   :  { %2901 = vmatpush3.bf16.msra.mxu0 %v3627_v47 }
 0x143   :  { %2902 = vmatprep.subr.bf16.mxu0 %v3153_v4 }
 0x146   :  { %2904 = vmatpush3.bf16.msra.mxu0 %v3638_v57 }
 0x147   :  { %2905 = vmatprep.subr.bf16.mxu0 %v3153_v4 }
 0x14a   :  { %2907 = vmatpush3.bf16.msra.mxu0 %v3648_v61 }
 0x14b   :  { %2908 = vmatprep.subr.bf16.mxu0 %v3153_v4 }
 0x14e   :  { %2910 = vmatpush3.bf16.msra.mxu0 %v3658_v1 }
 0x14f   :  { %2911 = vmatprep.subr.bf16.mxu0 %v3153_v4 }
 0x152   :  { %2913 = vmatpush3.bf16.msra.mxu0 %v3668_v7 }
 0x153   :  { %2914 = vmatprep.subr.bf16.mxu0 %v3153_v4 }
 0x156   :  { %2916 = vmatpush3.bf16.msra.mxu0 %v3678_v11 }
 0x157   :  { %2917 = vmatprep.subr.bf16.mxu0 %v3153_v4 }
 0x15a   :  { %2919 = vmatpush3.bf16.msra.mxu0 %v3712_v24 }
 0x15b   :  { %2992 = vmatprep.subr.bf16.mxu0 %v3153_v4 }
 0x20c   :  { %v485_v32 = vpop.f32.mrb[0].mxu1 }
 0x20d   :  { %v2256_v33 = vpop.f32.mrb[1].mxu1 }
 0x20e   :  { %v721_v33 = vld [vmem:[%s3920_s7] sm:$0x3] }
 0x20f   :  { %v730_v42 = vrot.slane %v721_v33, %v729_v36 }
 0x210   :  { %v697_v46 = vpop.f32.mrb[8].mxu0 }
 0x211   :  { %v702_v50 = vmax.f32 %v485_v32, %v697_v46  ;;  %v2361_v51 = vpop.f32.mrb[9].mxu0  ;;  %v725_v32 = vsub.s32 0, %v3718_v55 }
 0x213   :  { %704 = vrot.lane.b32.xlu0 %v702_v50, %s3155_s22  ;;  %v726_v37 = vrot.slane %v721_v33, %v725_v32 }
 0x285   :  { %v705_v14 = vpop.permute.xlu0 %704 }
 0x286   :  { %v707_v15 = vmax.f32 %v702_v50, %v705_v14 }
 0x288   :  { %v715_v17 = vadd.f32 %v3686_v12, %v707_v15 }
 0x28a   :  { %v716_v18 = vmax.f32 %v715_v17, 0.0 }
 0x28c   :  { %1838 = vmatmul.mubr.msk.f32.vlgmr.msra.gmra.mrb[2].mxu1 %vm733_vm3, %v716_v18 }
 0x28d   :  { %2874 = vmatpush3.bf16.msra.mxu1 %v3618_v39  ;;  %2394 = vmatprep.mubr.msk.f32.mxu1 %vm3154_vm2, %v3152_v3 }
 0x28e   :  { %2875 = vmatprep.subr.bf16.mxu1 %v3153_v4 }
 0x291   :  { %2877 = vmatpush3.bf16.msra.mxu1 %v3627_v47 }
 0x292   :  { %2878 = vmatprep.subr.bf16.mxu1 %v3153_v4 }
 0x295   :  { %2880 = vmatpush3.bf16.msra.mxu1 %v3638_v57 }
 0x296   :  { %2881 = vmatprep.subr.bf16.mxu1 %v3153_v4 }
 0x299   :  { %2883 = vmatpush3.bf16.msra.mxu1 %v3648_v61 }
 0x29a   :  { %2884 = vmatprep.subr.bf16.mxu1 %v3153_v4 }
 0x29d   :  { %2886 = vmatpush3.bf16.msra.mxu1 %v3658_v1 }
 0x29e   :  { %2887 = vmatprep.subr.bf16.mxu1 %v3153_v4 }
 0x2a1   :  { %2889 = vmatpush3.bf16.msra.mxu1 %v3668_v7 }
 0x2a2   :  { %2890 = vmatprep.subr.bf16.mxu1 %v3153_v4 }
 0x2a5   :  { %2892 = vmatpush3.bf16.msra.mxu1 %v3678_v11 }
 0x2a6   :  { %2893 = vmatprep.subr.bf16.mxu1 %v3153_v4 }
 0x2a9   :  { %2895 = vmatpush3.bf16.msra.mxu1 %v3712_v24 }
 0x2aa   :  { %2920 = vmatprep.subr.bf16.mxu1 %v3153_v4 }
 0x35f   :  { %v803_v43 = vpop.f32.mrb[2].mxu1 }
 0x360   :  { %v804_v46 = vadd.f32 %v803_v43, %v726_v37  ;;  %v805_v50 = vpop.f32.mrb[3].mxu1 }
 0x361   :  { %v806_v51 = vadd.f32 %v805_v50, %v730_v42 }
 0x362   :  { %v808_v53 = vmax.f32 %v804_v46, 0.0 }
 0x363   :  { %v809_v54 = vmax.f32 %v806_v51, 0.0 }
 0x364   :  { %2395 = vmatmul.mubr.f32.vlgmr.msra.gmra.mrb[4].mxu1 %v808_v53 }
 0x365   :  { %2922 = vmatpush3.bf16.msra.mxu1 %v3254_v21  ;;  %2430 = vmatmul.mubr.f32.vlgmr.msra.gmra.mrb[10].mxu0 %v809_v54 }
 0x366   :  { %2994 = vmatpush3.bf16.msra.mxu0 %v3254_v21  ;;  %2923 = vmatprep.subr.bf16.mxu1 %v3153_v4  ;;  %v1027_v21 = vld [vmem:[#allocation2 + $0x9] sm:$0xf] }
 0x367   :  { %2995 = vmatprep.subr.bf16.mxu0 %v3153_v4  ;;  %2464 = vmatprep.mubr.msk.f32.mxu1 %vm3154_vm2, %v3152_v3 }
 0x368   :  { %2569 = vmatprep.mubr.msk.f32.mxu0 %vm3154_vm2, %v3152_v3 }
 0x369   :  { %2925 = vmatpush3.bf16.msra.mxu1 %v3263_v25 }
 0x36a   :  { %2997 = vmatpush3.bf16.msra.mxu0 %v3263_v25  ;;  %2926 = vmatprep.subr.bf16.mxu1 %v3153_v4  ;;  %v3765_v25 = vld [vmem:[#allocation2 + $0x19] sm:$0xf] }
 0x36b   :  { %2998 = vmatprep.subr.bf16.mxu0 %v3153_v4 }
 0x36d   :  { %2928 = vmatpush3.bf16.msra.mxu1 %v3276_v29 }
 0x36e   :  { %3000 = vmatpush3.bf16.msra.mxu0 %v3276_v29  ;;  %2929 = vmatprep.subr.bf16.mxu1 %v3153_v4  ;;  %v1010_v29 = vld [vmem:[#allocation2 + $0x18] sm:$0xf] }
 0x36f   :  { %3001 = vmatprep.subr.bf16.mxu0 %v3153_v4 }
 0x371   :  { %2931 = vmatpush3.bf16.msra.mxu1 %v3307_v35 }
 0x372   :  { %3003 = vmatpush3.bf16.msra.mxu0 %v3307_v35  ;;  %2932 = vmatprep.subr.bf16.mxu1 %v3153_v4  ;;  %v1412_v35 = vld [vmem:[#allocation2 + $0xa] sm:$0xf] }
 0x373   :  { %3004 = vmatprep.subr.bf16.mxu0 %v3153_v4 }
 0x375   :  { %2934 = vmatpush3.bf16.msra.mxu1 %v3319_v38 }
 0x376   :  { %3006 = vmatpush3.bf16.msra.mxu0 %v3319_v38  ;;  %2935 = vmatprep.subr.bf16.mxu1 %v3153_v4  ;;  %v3864_v38 = vld [vmem:[%s3921_s8] ss:$0 sm:$0xff] }
 0x377   :  { %3007 = vmatprep.subr.bf16.mxu0 %v3153_v4 }
 0x379   :  { %2937 = vmatpush3.bf16.msra.mxu1 %v3331_v41 }
 0x37a   :  { %3009 = vmatpush3.bf16.msra.mxu0 %v3331_v41  ;;  %2938 = vmatprep.subr.bf16.mxu1 %v3153_v4 }
 0x37b   :  { %3010 = vmatprep.subr.bf16.mxu0 %v3153_v4 }
 0x37d   :  { %2940 = vmatpush3.bf16.msra.mxu1 %v3343_v44 }
 0x37e   :  { %3012 = vmatpush3.bf16.msra.mxu0 %v3343_v44  ;;  %2941 = vmatprep.subr.bf16.mxu1 %v3153_v4 }
 0x37f   :  { %3013 = vmatprep.subr.bf16.mxu0 %v3153_v4 }
 0x381   :  { %2943 = vmatpush3.bf16.msra.mxu1 %v3359_v48 }
 0x382   :  { %3015 = vmatpush3.bf16.msra.mxu0 %v3359_v48  ;;  %2944 = vmatprep.subr.bf16.mxu1 %v3153_v4 }
 0x383   :  { %3016 = vmatprep.subr.bf16.mxu0 %v3153_v4 }
 0x384   :  { %2465 = vmatmul.mubr.f32.vlgmr.msra.gmra.mrb[6].mxu1 %v1027_v21 }
 0x385   :  { %2946 = vmatpush3.bf16.msra.mxu1 %v3387_v5  ;;  %2570 = vmatmul.mubr.f32.vlgmr.msra.gmra.mrb[12].mxu0 %v3765_v25 }
 0x386   :  { %3018 = vmatpush3.bf16.msra.mxu0 %v3387_v5  ;;  %2947 = vmatprep.subr.bf16.mxu1 %v3153_v4 }
 0x387   :  { %3019 = vmatprep.subr.bf16.mxu0 %v3153_v4  ;;  %2499 = vmatprep.mubr.msk.f32.mxu1 %vm3154_vm2, %v3152_v3 }
 0x388   :  { %2604 = vmatprep.mubr.msk.f32.mxu0 %vm3154_vm2, %v3152_v3 }
 0x389   :  { %2949 = vmatpush3.bf16.msra.mxu1 %v3399_v9 }
 0x38a   :  { %3021 = vmatpush3.bf16.msra.mxu0 %v3399_v9  ;;  %2950 = vmatprep.subr.bf16.mxu1 %v3153_v4 }
 0x38b   :  { %3022 = vmatprep.subr.bf16.mxu0 %v3153_v4 }
 0x38d   :  { %2952 = vmatpush3.bf16.msra.mxu1 %v3415_v13 }
 0x38e   :  { %3024 = vmatpush3.bf16.msra.mxu0 %v3415_v13  ;;  %2953 = vmatprep.subr.bf16.mxu1 %v3153_v4 }
 0x38f   :  { %3025 = vmatprep.subr.bf16.mxu0 %v3153_v4 }
 0x391   :  { %2955 = vmatpush3.bf16.msra.mxu1 %v3429_v16 }
 0x392   :  { %3027 = vmatpush3.bf16.msra.mxu0 %v3429_v16  ;;  %2956 = vmatprep.subr.bf16.mxu1 %v3153_v4 }
 0x393   :  { %3028 = vmatprep.subr.bf16.mxu0 %v3153_v4 }
 0x395   :  { %2958 = vmatpush3.bf16.msra.mxu1 %v3441_v19 }
 0x396   :  { %3030 = vmatpush3.bf16.msra.mxu0 %v3441_v19  ;;  %2959 = vmatprep.subr.bf16.mxu1 %v3153_v4 }
 0x397   :  { %3031 = vmatprep.subr.bf16.mxu0 %v3153_v4 }
 0x399   :  { %2961 = vmatpush3.bf16.msra.mxu1 %v3453_v23 }
 0x39a   :  { %3033 = vmatpush3.bf16.msra.mxu0 %v3453_v23  ;;  %2962 = vmatprep.subr.bf16.mxu1 %v3153_v4 }
 0x39b   :  { %3034 = vmatprep.subr.bf16.mxu0 %v3153_v4 }
 0x39d   :  { %2964 = vmatpush3.bf16.msra.mxu1 %v3465_v27 }
 0x39e   :  { %3036 = vmatpush3.bf16.msra.mxu0 %v3465_v27  ;;  %2965 = vmatprep.subr.bf16.mxu1 %v3153_v4 }
 0x39f   :  { %3037 = vmatprep.subr.bf16.mxu0 %v3153_v4 }
 0x3a1   :  { %2967 = vmatpush3.bf16.msra.mxu1 %v3477_v31 }
 0x3a2   :  { %3039 = vmatpush3.bf16.msra.mxu0 %v3477_v31  ;;  %2968 = vmatprep.subr.bf16.mxu1 %v3153_v4 }
 0x3a3   :  { %3040 = vmatprep.subr.bf16.mxu0 %v3153_v4 }
 0x3a4   :  { %2500 = vmatmul.mubr.f32.vlgmr.msra.gmra.mrb[6].mxu1 %v1010_v29 }
 0x3a5   :  { %2970 = vmatpush3.bf16.msra.mxu1 %v3489_v34  ;;  %2605 = vmatmul.mubr.f32.vlgmr.msra.gmra.mrb[12].mxu0 %v1027_v21 }
 0x3a6   :  { %3042 = vmatpush3.bf16.msra.mxu0 %v3489_v34  ;;  %2971 = vmatprep.subr.bf16.mxu1 %v3153_v4 }
 0x3a7   :  { %3043 = vmatprep.subr.bf16.mxu0 %v3153_v4  ;;  %2534 = vmatprep.mubr.msk.f32.mxu1 %vm3154_vm2, %v3152_v3 }
 0x3a8   :  { %2639 = vmatprep.mubr.msk.f32.mxu0 %vm3154_vm2, %v3152_v3 }
 0x3a9   :  { %2973 = vmatpush3.bf16.msra.mxu1 %v3501_v40 }
 0x3aa   :  { %3045 = vmatpush3.bf16.msra.mxu0 %v3501_v40  ;;  %2974 = vmatprep.subr.bf16.mxu1 %v3153_v4 }
 0x3ab   :  { %3046 = vmatprep.subr.bf16.mxu0 %v3153_v4 }
 0x3ad   :  { %2976 = vmatpush3.bf16.msra.mxu1 %v3516_v45 }
 0x3ae   :  { %3048 = vmatpush3.bf16.msra.mxu0 %v3516_v45  ;;  %2977 = vmatprep.subr.bf16.mxu1 %v3153_v4 }
 0x3af   :  { %3049 = vmatprep.subr.bf16.mxu0 %v3153_v4 }
 0x3b1   :  { %2979 = vmatpush3.bf16.msra.mxu1 %v3530_v49 }
 0x3b2   :  { %3051 = vmatpush3.bf16.msra.mxu0 %v3530_v49  ;;  %2980 = vmatprep.subr.bf16.mxu1 %v3153_v4 }
 0x3b3   :  { %3052 = vmatprep.subr.bf16.mxu0 %v3153_v4 }
 0x3b5   :  { %2982 = vmatpush3.bf16.msra.mxu1 %v3542_v52 }
 0x3b6   :  { %3054 = vmatpush3.bf16.msra.mxu0 %v3542_v52  ;;  %2983 = vmatprep.subr.bf16.mxu1 %v3153_v4 }
 0x3b7   :  { %3055 = vmatprep.subr.bf16.mxu0 %v3153_v4 }
 0x3b9   :  { %2985 = vmatpush3.bf16.msra.mxu1 %v3554_v56 }
 0x3ba   :  { %3057 = vmatpush3.bf16.msra.mxu0 %v3554_v56  ;;  %2986 = vmatprep.subr.bf16.mxu1 %v3153_v4 }
 0x3bb   :  { %3058 = vmatprep.subr.bf16.mxu0 %v3153_v4 }
 0x3bd   :  { %2988 = vmatpush3.bf16.msra.mxu1 %v3566_v59 }
 0x3be   :  { %3060 = vmatpush3.bf16.msra.mxu0 %v3566_v59  ;;  %2989 = vmatprep.subr.bf16.mxu1 %v3153_v4 }
 0x3bf   :  { %3061 = vmatprep.subr.bf16.mxu0 %v3153_v4 }
 0x3c1   :  { %2991 = vmatpush3.bf16.msra.mxu1 %v3578_v62 }
 0x3c2   :  { %3063 = vmatpush3.bf16.msra.mxu0 %v3578_v62  ;;  %3065 = vmatprep.subr.bf16.mxu1 %v3599_v26 }
 0x3c3   :  { %3092 = vmatprep.subr.bf16.mxu0 %v3153_v4 }
 0x3c4   :  { %2535 = vmatmul.mubr.f32.vlgmr.msra.gmra.mrb[6].mxu1 %v3765_v25 }
 0x3c5   :  { %2640 = vmatmul.mubr.f32.vlgmr.msra.gmra.mrb[12].mxu0 %v1412_v35  ;;  %3067 = vmatpush1.bf16.msra.mxu1 %v3607_v30 }
 0x3c6   :  { %1582 = vmatprep.mubr.f32.mxu1 %v3152_v3  ;;  %3068 = vmatprep.subr.bf16.mxu1 %v3153_v4 }
 0x3c7   :  { %3094 = vmatpush3.bf16.msra.mxu0 %v3618_v39  ;;  %2709 = vmatprep.mubr.msk.f32.mxu0 %vm3154_vm2, %v3152_v3 }
 0x3c8   :  { %3095 = vmatprep.subr.bf16.mxu0 %v3153_v4 }
 0x3cb   :  { %3097 = vmatpush3.bf16.msra.mxu0 %v3627_v47 }
 0x3cc   :  { %3098 = vmatprep.subr.bf16.mxu0 %v3153_v4 }
 0x3cf   :  { %3100 = vmatpush3.bf16.msra.mxu0 %v3638_v57 }
 0x3d0   :  { %3101 = vmatprep.subr.bf16.mxu0 %v3153_v4 }
 0x3d3   :  { %3103 = vmatpush3.bf16.msra.mxu0 %v3648_v61 }
 0x3d4   :  { %3104 = vmatprep.subr.bf16.mxu0 %v3153_v4 }
 0x3d7   :  { %3106 = vmatpush3.bf16.msra.mxu0 %v3658_v1 }
 0x3d8   :  { %3107 = vmatprep.subr.bf16.mxu0 %v3153_v4 }
 0x3db   :  { %3109 = vmatpush3.bf16.msra.mxu0 %v3668_v7 }
 0x3dc   :  { %3110 = vmatprep.subr.bf16.mxu0 %v3153_v4 }
 0x3df   :  { %3112 = vmatpush3.bf16.msra.mxu0 %v3678_v11 }
 0x3e0   :  { %3113 = vmatprep.subr.bf16.mxu0 %v3153_v4 }
 0x3e3   :  { %3115 = vmatpush3.bf16.msra.mxu0 %v3712_v24 }
 0x437   :  { %v899_v41 = vpop.f32.mrb[4].mxu1 }
 0x438   :  { %v900_v44 = vadd.f32 %v3864_v38, %v899_v41  ;;  %v2396_v48 = vpop.f32.mrb[5].mxu1  ;;  %v999_v5 = vpop.f32.mrb[10].mxu0 }
 0x439   :  { %v1000_v9 = vadd.f32 %v3864_v38, %v999_v5  ;;  %v2431_v13 = vpop.f32.mrb[11].mxu0 }
 0x43a   :  { %v903_v16 = vsub.f32 0.0, %v900_v44 }
 0x43b   :  { %v1003_v19 = vsub.f32 0.0, %v1000_v9 }
 0x43c   :  { %v904_v23 = vmul.f32 1.442695, %v903_v16 }
 0x43d   :  { %v1004_v27 = vmul.f32 1.442695, %v1003_v19 }
 0x43e   :  { %3136 = vpow2.f32 %v904_v23 }
 0x43f   :  { %3138 = vpow2.f32 %v1004_v27 }
 0x448   :  { %v3137_v31 = vpop.eup %3136 }
 0x449   :  { %v3139_v34 = vpop.eup %3138  ;;  %v906_v40 = vadd.f32 1.0, %v3137_v31 }
 0x44a   :  { %v1006_v45 = vadd.f32 1.0, %v3139_v34 }
 0x44b   :  { %3140 = vrcp.f32 %v906_v40 }
 0x44c   :  { %3142 = vrcp.f32 %v1006_v45 }
 0x455   :  { %v3141_v49 = vpop.eup %3140 }
 0x456   :  { %v3143_v52 = vpop.eup %3142  ;;  %909 = vst.msk [vmem:[%s3922_s9] sm:$0xf] %vm908_vm4, %v3141_v49 }
 0x457   :  { %1841 = vst.msk [vmem:[%s3922_s9 + $0x4] sm:$0xf] %vm908_vm4, %v3143_v52 }
 0x497   :  { %v1267_v56 = vpop.f32.mrb[6].mxu1 }
 0x498   :  { %v2536_v59 = vpop.f32.mrb[7].mxu1  ;;  %v1479_v62 = vpop.f32.mrb[12].mxu0 }
 0x499   :  { %v1484_v26 = vmax.f32 %v1267_v56, %v1479_v62  ;;  %v2641_v30 = vpop.f32.mrb[13].mxu0 }
 0x49b   :  { %1486 = vrot.lane.b32.xlu0 %v1484_v26, %s3155_s22 }
 0x50d   :  { %v1487_v58 = vpop.permute.xlu0 %1486 }
 0x50e   :  { %v1489_v60 = vmax.f32 %v1484_v26, %v1487_v58 }
 0x510   :  { %v1497_v63 = vadd.f32 %v3686_v12, %v1489_v60 }
 0x512   :  { %v1498_v0 = vmax.f32 %v1497_v63, 0.0 }
 0x514   :  { %1875 = vmatmul.mubr.msk.f32.vlgmr.msra.gmra.mrb[8].mxu1 %vm733_vm3, %v1498_v0 }
 0x515   :  { %3070 = vmatpush3.bf16.msra.mxu1 %v3618_v39  ;;  %2674 = vmatprep.mubr.msk.f32.mxu1 %vm3154_vm2, %v3152_v3  ;;  %v1503_v3 = vld [vmem:[%s3920_s7] sm:$0x3] }
 0x516   :  { %3071 = vmatprep.subr.bf16.mxu1 %v3153_v4  ;;  %v1508_v39 = vrot.slane %v1503_v3, %v725_v32 }
 0x519   :  { %3073 = vmatpush3.bf16.msra.mxu1 %v3627_v47  ;;  %v1512_v47 = vrot.slane %v1503_v3, %v729_v36 }
 0x51a   :  { %3074 = vmatprep.subr.bf16.mxu1 %v3153_v4 }
 0x51d   :  { %3076 = vmatpush3.bf16.msra.mxu1 %v3638_v57 }
 0x51e   :  { %3077 = vmatprep.subr.bf16.mxu1 %v3153_v4 }
 0x521   :  { %3079 = vmatpush3.bf16.msra.mxu1 %v3648_v61 }
 0x522   :  { %3080 = vmatprep.subr.bf16.mxu1 %v3153_v4 }
 0x525   :  { %3082 = vmatpush3.bf16.msra.mxu1 %v3658_v1 }
 0x526   :  { %3083 = vmatprep.subr.bf16.mxu1 %v3153_v4 }
 0x529   :  { %3085 = vmatpush3.bf16.msra.mxu1 %v3668_v7 }
 0x52a   :  { %3086 = vmatprep.subr.bf16.mxu1 %v3153_v4 }
 0x52d   :  { %3088 = vmatpush3.bf16.msra.mxu1 %v3678_v11 }
 0x52e   :  { %3089 = vmatprep.subr.bf16.mxu1 %v3153_v4 }
 0x531   :  { %3091 = vmatpush3.bf16.msra.mxu1 %v3712_v24 }
 0x5e7   :  { %v1584_v57 = vpop.f32.mrb[8].mxu1 }
 0x5e8   :  { %v1585_v61 = vadd.f32 %v1584_v57, %v1508_v39  ;;  %v1586_v1 = vpop.f32.mrb[9].mxu1 }
 0x5e9   :  { %v1587_v2 = vadd.f32 %v1586_v1, %v1512_v47 }
 0x5ea   :  { %v1589_v6 = vmax.f32 %v1585_v61, 0.0 }
 0x5eb   :  { %v1590_v7 = vmax.f32 %v1587_v2, 0.0 }
 0x5ec   :  { %2675 = vmatmul.mubr.f32.vlgmr.msra.gmra.mrb[10].mxu1 %v1589_v6 }
 0x5ed   :  { %2710 = vmatmul.mubr.f32.vlgmr.msra.gmra.mrb[14].mxu0 %v1590_v7 }
 0x6bf   :  { %v1680_v4 = vpop.f32.mrb[10].mxu1 }
 0x6c0   :  { %v1681_v8 = vadd.f32 %v3864_v38, %v1680_v4  ;;  %v2676_v10 = vpop.f32.mrb[11].mxu1  ;;  %v1780_v11 = vpop.f32.mrb[14].mxu0 }
 0x6c1   :  { %v1781_v12 = vadd.f32 %v3864_v38, %v1780_v11  ;;  %v2711_v14 = vpop.f32.mrb[15].mxu0 }
 0x6c2   :  { %v1684_v15 = vsub.f32 0.0, %v1681_v8 }
 0x6c3   :  { %v1784_v17 = vsub.f32 0.0, %v1781_v12 }
 0x6c4   :  { %v1685_v18 = vmul.f32 1.442695, %v1684_v15 }
 0x6c5   :  { %v1785_v20 = vmul.f32 1.442695, %v1784_v17 }
 0x6c6   :  { %3144 = vpow2.f32 %v1685_v18 }
 0x6c7   :  { %3146 = vpow2.f32 %v1785_v20 }
 0x6d0   :  { %v3145_v22 = vpop.eup %3144 }
 0x6d1   :  { %v3147_v24 = vpop.eup %3146  ;;  %v1687_v28 = vadd.f32 1.0, %v3145_v22 }
 0x6d2   :  { %v1787_v55 = vadd.f32 1.0, %v3147_v24 }
 0x6d3   :  { %3148 = vrcp.f32 %v1687_v28 }
 0x6d4   :  { %3150 = vrcp.f32 %v1787_v55 }
 0x6dd   :  { %v3149_v32 = vpop.eup %3148 }
 0x6de   :  { %v3151_v33 = vpop.eup %3150  ;;  %1877 = vst.msk [vmem:[%s3922_s9 + $0x8] sm:$0xf] %vm908_vm4, %v3149_v32 }
 0x6df   :  { %1879 = vst.msk [vmem:[%s3922_s9 + $0xc] sm:$0xf] %vm908_vm4, %v3151_v33 }

</bundles_post_ra>
